<compile_context>
chip_gen: v5e
topology: v5e:2x2
jax: 0.10.0
libtpu: 0.0.40
codegen_flags: <defaults>
</compile_context>

<pallas_src>
import math

import jax
import jax.numpy as jnp
from jax.experimental import pallas as pl
from jax.experimental.pallas import tpu as pltpu


def _round_up(a: int, b: int) -> int:
    return (a + b - 1) // b * b


def _reg_layer_kernel(x_ref, wsh_ref, bsh_ref, wh1_ref, bh1_ref, wh2_ref, bh2_ref,
                      o_ref):
    """One token tile: shared FC stack -> fused task heads -> concatenated output."""
    f32 = jnp.float32
    mm = jnp.bfloat16  # MXU operand dtype; accumulation stays f32.

    h = x_ref[...]
    n_shared = wsh_ref.shape[0]
    for l in range(n_shared):                      # static, unrolled
        h = jnp.dot(h.astype(mm), wsh_ref[l],
                    preferred_element_type=f32) + bsh_ref[l]
        h = jnp.maximum(h, 0.0)                    # ReLU (Dropout p=0.0 == identity)

    # Fused task heads: layer-1 weights concatenated along the output dim,
    # layer-2 weights block-diagonal -> result is already concat(out_i, -1).
    t = jnp.dot(h.astype(mm), wh1_ref[...],
                preferred_element_type=f32) + bh1_ref[...]
    t = jnp.maximum(t, 0.0)
    o = jnp.dot(t.astype(mm), wh2_ref[...],
                preferred_element_type=f32) + bh2_ref[...]
    o_ref[...] = o.astype(o_ref.dtype)


def reg_layer_pallas(x, shared_ws, shared_bs, head_ws1, head_bs1, head_ws2, head_bs2,
                     *, tm=512):
    """RegLayer forward.

    x: (..., D) float array.
    shared_ws / shared_bs: lists of PyTorch-layout Linear params, (D, D) / (D,).
    head_ws1 / head_bs1:   per-head first Linear, (D, D) / (D,).
    head_ws2 / head_bs2:   per-head output Linear, (reg_dim_i, D) / (reg_dim_i,).
    Returns (..., sum(reg_dim_i)).
    """
    D = x.shape[-1]
    lead = x.shape[:-1]
    M = math.prod(lead) if lead else 1
    H = len(head_ws1)
    T = sum(int(w.shape[0]) for w in head_ws2)

    # PyTorch Linear weight is (out, in); the kernel multiplies (tokens, in) @ (in, out).
    # Weights go to bf16 (MXU operands + halved HBM/DMA bytes); biases stay f32.
    wsh = jnp.stack([w.T for w in shared_ws]).astype(jnp.bfloat16)             # (S, D, D)
    bsh = jnp.stack([b.reshape(1, D) for b in shared_bs]).astype(jnp.float32)  # (S, 1, D)
    wh1 = jnp.concatenate([w.T for w in head_ws1], axis=1).astype(jnp.bfloat16)  # (D, H*D)
    bh1 = jnp.concatenate(head_bs1).reshape(1, H * D).astype(jnp.float32)
    wh2 = jax.scipy.linalg.block_diag(*[w.T for w in head_ws2]).astype(jnp.bfloat16)  # (H*D, T)
    bh2 = jnp.concatenate(head_bs2).reshape(1, T).astype(jnp.float32)

    # Token tiling: big tiles (per-grid-step overhead ~0.35us), zero-padded tail
    # instead of a hard divisibility assert so tm can stay performance-optimal.
    tm = _round_up(max(int(tm), 8), 8)
    tm_eff = min(tm, _round_up(M, 8))
    M_pad = _round_up(M, tm_eff)

    x2 = x.reshape(M, D).astype(jnp.float32)
    if M_pad != M:
        x2 = jnp.pad(x2, ((0, M_pad - M), (0, 0)))

    grid = (M_pad // tm_eff,)

    out = pl.pallas_call(
        _reg_layer_kernel,
        out_shape=jax.ShapeDtypeStruct((M_pad, T), jnp.float32),
        grid_spec=pltpu.PrefetchScalarGridSpec(
            num_scalar_prefetch=0,
            grid=grid,
            in_specs=[
                pl.BlockSpec((tm_eff, D), lambda i: (i, 0)),     # token tile
                pl.BlockSpec(wsh.shape, lambda i: (0, 0, 0)),    # shared weights (resident)
                pl.BlockSpec(bsh.shape, lambda i: (0, 0, 0)),    # shared biases
                pl.BlockSpec(wh1.shape, lambda i: (0, 0)),       # fused head L1 weight
                pl.BlockSpec(bh1.shape, lambda i: (0, 0)),       # fused head L1 bias
                pl.BlockSpec(wh2.shape, lambda i: (0, 0)),       # block-diag head L2 weight
                pl.BlockSpec(bh2.shape, lambda i: (0, 0)),       # head L2 bias (concat)
            ],
            out_specs=pl.BlockSpec((tm_eff, T), lambda i: (i, 0)),
        ),
        compiler_params=pltpu.CompilerParams(
            # "parallel" lets v7x shard the token axis across its 2 TensorCores
            # (neutral on v5e/v6e). Resident bf16 weights + double-buffered token
            # tiles cost ~3 MiB, so 32 MiB scoped VMEM is ample on every generation
            # (v7x physical VMEM is 64 MiB).
            dimension_semantics=("parallel",),
            vmem_limit_bytes=32 * 1024 * 1024,
        ),
    )(x2, wsh, bsh, wh1, bh1, wh2, bh2)

    return out[:M].reshape(lead + (T,))


def reg_layer_ref(x, shared_ws, shared_bs, head_ws1, head_bs1, head_ws2, head_bs2):
    """Pure-JAX f32 reference mirroring the PyTorch forward (eval mode)."""
    hp = jax.lax.Precision.HIGHEST
    h = x
    for w, b in zip(shared_ws, shared_bs):
        h = jnp.maximum(jnp.dot(h, w.T, precision=hp) + b, 0.0)  # Dropout(0.0) == id
    outs = []
    for w1, b1, w2, b2 in zip(head_ws1, head_bs1, head_ws2, head_bs2):
        t = jnp.maximum(jnp.dot(h, w1.T, precision=hp) + b1, 0.0)
        outs.append(jnp.dot(t, w2.T, precision=hp) + b2)
    return jnp.concatenate(outs, axis=-1)


if __name__ == "__main__":
    D = 256                         # embed_dims (module default)
    group_reg_dims = (2, 1, 3, 2, 2)
    shared_reg_fcs = 2
    B, Q = 2, 8                     # batch, queries -> 16 tokens

    n_heads = len(group_reg_dims)
    keys = iter(jax.random.split(jax.random.PRNGKey(0),
                                 1 + 2 * shared_reg_fcs + 4 * n_heads))

    x = jax.random.normal(next(keys), (B, Q, D), jnp.float32)

    ws = 1.0 / (D ** 0.5)
    shared_ws = [ws * jax.random.normal(next(keys), (D, D), jnp.float32)
                 for _ in range(shared_reg_fcs)]
    shared_bs = [0.02 * jax.random.normal(next(keys), (D,), jnp.float32)
                 for _ in range(shared_reg_fcs)]
    head_ws1 = [ws * jax.random.normal(next(keys), (D, D), jnp.float32)
                for _ in range(n_heads)]
    head_bs1 = [0.02 * jax.random.normal(next(keys), (D,), jnp.float32)
                for _ in range(n_heads)]
    head_ws2 = [ws * jax.random.normal(next(keys), (r, D), jnp.float32)
                for r in group_reg_dims]
    head_bs2 = [0.02 * jax.random.normal(next(keys), (r,), jnp.float32)
                for r in group_reg_dims]

    out = reg_layer_pallas(x, shared_ws, shared_bs,
                           head_ws1, head_bs1, head_ws2, head_bs2)
    out = jax.block_until_ready(out)

    ref = reg_layer_ref(x, shared_ws, shared_bs,
                        head_ws1, head_bs1, head_ws2, head_bs2)

    assert out.shape == (B, Q, sum(group_reg_dims))
    err = float(jnp.max(jnp.abs(out - ref)))
    # bf16 MXU operands with f32 accumulation over K <= 1280 give a few-1e-3 absolute
    # error on O(1)-scale activations; 5e-2 leaves >3x headroom.
    assert err < 5e-2, f"mismatch vs reference: max abs err = {err}"

    print("KERNEL_OK")
</pallas_src>

<mosaic_0001>
module attributes {stable_mosaic.version = 11 : i64} {
  func.func @_reg_layer_kernel(%arg0: i32, %arg1: memref<16x256xf32, #tpu.memory_space<vmem>>, %arg2: memref<2x256x256xbf16, #tpu.memory_space<vmem>>, %arg3: memref<2x1x256xf32, #tpu.memory_space<vmem>>, %arg4: memref<256x1280xbf16, #tpu.memory_space<vmem>>, %arg5: memref<1x1280xf32, #tpu.memory_space<vmem>>, %arg6: memref<1280x10xbf16, #tpu.memory_space<vmem>>, %arg7: memref<1x10xf32, #tpu.memory_space<vmem>>, %arg8: memref<16x10xf32, #tpu.memory_space<vmem>>) attributes {dimension_semantics = [#tpu.dimension_semantics<parallel>], iteration_bounds = array<i64: 1>, scalar_prefetch = 0 : i64, scratch_operands = 0 : i64, tpu.core_type = #tpu.core_type<tc>, window_params = [{transform_indices = @transform_0, window_bounds = array<i64: 16, 256>}, {pipeline_mode = #tpu.pipeline_mode<synchronous>, transform_indices = @transform_1, window_bounds = array<i64: 2, 256, 256>}, {pipeline_mode = #tpu.pipeline_mode<synchronous>, transform_indices = @transform_2, window_bounds = array<i64: 2, 1, 256>}, {pipeline_mode = #tpu.pipeline_mode<synchronous>, transform_indices = @transform_3, window_bounds = array<i64: 256, 1280>}, {pipeline_mode = #tpu.pipeline_mode<synchronous>, transform_indices = @transform_4, window_bounds = array<i64: 1, 1280>}, {pipeline_mode = #tpu.pipeline_mode<synchronous>, transform_indices = @transform_5, window_bounds = array<i64: 1280, 10>}, {pipeline_mode = #tpu.pipeline_mode<synchronous>, transform_indices = @transform_6, window_bounds = array<i64: 1, 10>}, {transform_indices = @transform_7, window_bounds = array<i64: 16, 10>}]} {
    %c0 = arith.constant 0 : index
    %c0_0 = arith.constant 0 : index
    %0 = vector.load %arg1[%c0, %c0_0] : memref<16x256xf32, #tpu.memory_space<vmem>>, vector<16x256xf32>
    %1 = arith.truncf %0 : vector<16x256xf32> to vector<16x256xbf16>
    %c0_1 = arith.constant 0 : index
    %c0_2 = arith.constant 0 : index
    %c0_3 = arith.constant 0 : index
    %2 = vector.load %arg2[%c0_1, %c0_2, %c0_3] : memref<2x256x256xbf16, #tpu.memory_space<vmem>>, vector<1x256x256xbf16>
    %3 = vector.shape_cast %2 : vector<1x256x256xbf16> to vector<256x256xbf16>
    %cst = arith.constant dense<0.000000e+00> : vector<16x256xf32>
    %4 = tpu.matmul %1, %3, %cst {dimension_numbers = #tpu.dot_dimension_numbers<[1], [0], [0], [1], [0, 0, 1, 1], [], []>} : vector<16x256xbf16>, vector<256x256xbf16>, vector<16x256xf32> -> vector<16x256xf32>
    %c0_4 = arith.constant 0 : index
    %c0_5 = arith.constant 0 : index
    %c0_6 = arith.constant 0 : index
    %5 = vector.load %arg3[%c0_4, %c0_5, %c0_6] : memref<2x1x256xf32, #tpu.memory_space<vmem>>, vector<1x1x256xf32>
    %6 = vector.shape_cast %5 : vector<1x1x256xf32> to vector<1x256xf32>
    %7 = vector.broadcast %6 : vector<1x256xf32> to vector<16x256xf32>
    %8 = arith.addf %4, %7 : vector<16x256xf32>
    %cst_7 = arith.constant 0.000000e+00 : f32
    %9 = vector.broadcast %cst_7 : f32 to vector<16x256xf32>
    %10 = arith.maximumf %8, %9 : vector<16x256xf32>
    %11 = arith.truncf %10 : vector<16x256xf32> to vector<16x256xbf16>
    %c1 = arith.constant 1 : index
    %c0_8 = arith.constant 0 : index
    %c0_9 = arith.constant 0 : index
    %12 = vector.load %arg2[%c1, %c0_8, %c0_9] : memref<2x256x256xbf16, #tpu.memory_space<vmem>>, vector<1x256x256xbf16>
    %13 = vector.shape_cast %12 : vector<1x256x256xbf16> to vector<256x256xbf16>
    %cst_10 = arith.constant dense<0.000000e+00> : vector<16x256xf32>
    %14 = tpu.matmul %11, %13, %cst_10 {dimension_numbers = #tpu.dot_dimension_numbers<[1], [0], [0], [1], [0, 0, 1, 1], [], []>} : vector<16x256xbf16>, vector<256x256xbf16>, vector<16x256xf32> -> vector<16x256xf32>
    %c1_11 = arith.constant 1 : index
    %c0_12 = arith.constant 0 : index
    %c0_13 = arith.constant 0 : index
    %15 = vector.load %arg3[%c1_11, %c0_12, %c0_13] : memref<2x1x256xf32, #tpu.memory_space<vmem>>, vector<1x1x256xf32>
    %16 = vector.shape_cast %15 : vector<1x1x256xf32> to vector<1x256xf32>
    %17 = vector.broadcast %16 : vector<1x256xf32> to vector<16x256xf32>
    %18 = arith.addf %14, %17 : vector<16x256xf32>
    %cst_14 = arith.constant 0.000000e+00 : f32
    %19 = vector.broadcast %cst_14 : f32 to vector<16x256xf32>
    %20 = arith.maximumf %18, %19 : vector<16x256xf32>
    %21 = arith.truncf %20 : vector<16x256xf32> to vector<16x256xbf16>
    %c0_15 = arith.constant 0 : index
    %c0_16 = arith.constant 0 : index
    %22 = vector.load %arg4[%c0_15, %c0_16] : memref<256x1280xbf16, #tpu.memory_space<vmem>>, vector<256x1280xbf16>
    %cst_17 = arith.constant dense<0.000000e+00> : vector<16x1280xf32>
    %23 = tpu.matmul %21, %22, %cst_17 {dimension_numbers = #tpu.dot_dimension_numbers<[1], [0], [0], [1], [0, 0, 1, 1], [], []>} : vector<16x256xbf16>, vector<256x1280xbf16>, vector<16x1280xf32> -> vector<16x1280xf32>
    %c0_18 = arith.constant 0 : index
    %c0_19 = arith.constant 0 : index
    %24 = vector.load %arg5[%c0_18, %c0_19] : memref<1x1280xf32, #tpu.memory_space<vmem>>, vector<1x1280xf32>
    %25 = vector.broadcast %24 : vector<1x1280xf32> to vector<16x1280xf32>
    %26 = arith.addf %23, %25 : vector<16x1280xf32>
    %cst_20 = arith.constant 0.000000e+00 : f32
    %27 = vector.broadcast %cst_20 : f32 to vector<16x1280xf32>
    %28 = arith.maximumf %26, %27 : vector<16x1280xf32>
    %29 = arith.truncf %28 : vector<16x1280xf32> to vector<16x1280xbf16>
    %c0_21 = arith.constant 0 : index
    %c0_22 = arith.constant 0 : index
    %30 = vector.load %arg6[%c0_21, %c0_22] : memref<1280x10xbf16, #tpu.memory_space<vmem>>, vector<1280x10xbf16>
    %cst_23 = arith.constant dense<0.000000e+00> : vector<16x10xf32>
    %31 = tpu.matmul %29, %30, %cst_23 {dimension_numbers = #tpu.dot_dimension_numbers<[1], [0], [0], [1], [0, 0, 1, 1], [], []>} : vector<16x1280xbf16>, vector<1280x10xbf16>, vector<16x10xf32> -> vector<16x10xf32>
    %c0_24 = arith.constant 0 : index
    %c0_25 = arith.constant 0 : index
    %32 = vector.load %arg7[%c0_24, %c0_25] : memref<1x10xf32, #tpu.memory_space<vmem>>, vector<1x10xf32>
    %33 = vector.broadcast %32 : vector<1x10xf32> to vector<16x10xf32>
    %34 = arith.addf %31, %33 : vector<16x10xf32>
    %c0_26 = arith.constant 0 : index
    %c0_27 = arith.constant 0 : index
    %35 = vector.load %arg8[%c0_26, %c0_27] : memref<16x10xf32, #tpu.memory_space<vmem>>, vector<16x10xf32>
    tpu.vector_store %arg8[%c0_26, %c0_27], %34 {strides = array<i32>} : memref<16x10xf32, #tpu.memory_space<vmem>>, vector<16x10xf32>,
    return
  }
  func.func @transform_0(%arg0: i32) -> (i32, i32) {
    %c0_i32 = arith.constant 0 : i32
    %c0_i32_0 = arith.constant 0 : i32
    return %arg0, %c0_i32 : i32, i32
  }
  func.func @transform_1(%arg0: i32) -> (i32, i32, i32) {
    %c0_i32 = arith.constant 0 : i32
    %c0_i32_0 = arith.constant 0 : i32
    %c0_i32_1 = arith.constant 0 : i32
    %c0_i32_2 = arith.constant 0 : i32
    return %c0_i32, %c0_i32_0, %c0_i32_1 : i32, i32, i32
  }
  func.func @transform_2(%arg0: i32) -> (i32, i32, i32) {
    %c0_i32 = arith.constant 0 : i32
    %c0_i32_0 = arith.constant 0 : i32
    %c0_i32_1 = arith.constant 0 : i32
    %c0_i32_2 = arith.constant 0 : i32
    return %c0_i32, %c0_i32_0, %c0_i32_1 : i32, i32, i32
  }
  func.func @transform_3(%arg0: i32) -> (i32, i32) {
    %c0_i32 = arith.constant 0 : i32
    %c0_i32_0 = arith.constant 0 : i32
    %c0_i32_1 = arith.constant 0 : i32
    return %c0_i32, %c0_i32_0 : i32, i32
  }
  func.func @transform_4(%arg0: i32) -> (i32, i32) {
    %c0_i32 = arith.constant 0 : i32
    %c0_i32_0 = arith.constant 0 : i32
    %c0_i32_1 = arith.constant 0 : i32
    return %c0_i32, %c0_i32_0 : i32, i32
  }
  func.func @transform_5(%arg0: i32) -> (i32, i32) {
    %c0_i32 = arith.constant 0 : i32
    %c0_i32_0 = arith.constant 0 : i32
    %c0_i32_1 = arith.constant 0 : i32
    return %c0_i32, %c0_i32_0 : i32, i32
  }
  func.func @transform_6(%arg0: i32) -> (i32, i32) {
    %c0_i32 = arith.constant 0 : i32
    %c0_i32_0 = arith.constant 0 : i32
    %c0_i32_1 = arith.constant 0 : i32
    return %c0_i32, %c0_i32_0 : i32, i32
  }
  func.func @transform_7(%arg0: i32) -> (i32, i32) {
    %c0_i32 = arith.constant 0 : i32
    %c0_i32_0 = arith.constant 0 : i32
    return %arg0, %c0_i32 : i32, i32
  }
}

</mosaic_0001>

<bundles_post_ra>
// kernel: tpu_custom_call.1
= control target key start
LH: loop header
LB: loop body
LE: loop exit
PB: predicated region body
PF: predicated region fallthrough
CT: control target
= control target key end

     0   :  { %12 = vsyncpa [#allocation3], 0  ;;  %s5026_s0 = inlined_call_operand.vmem [shape: f32[16,256], index: 0, kind: input, shape index: {}]   ;;  %s5027_s1 = inlined_call_operand.vmem [shape: bf16[2,256,256], index: 1, kind: input, shape index: {}]   ;;  %s5028_s2 = inlined_call_operand.vmem [shape: f32[2,1,256], index: 2, kind: input, shape index: {}]   ;;  %s5029_s3 = inlined_call_operand.hbm [shape: bf16[256,1280], index: 3, kind: input, shape index: {}]   ;;  %s5030_s4 = inlined_call_operand.vmem [shape: f32[1,1280], index: 4, kind: input, shape index: {}]   ;;  %s5031_s5 = inlined_call_operand.vmem [shape: bf16[1280,10], index: 5, kind: input, shape index: {}]   ;;  %s5032_s6 = inlined_call_operand.vmem [shape: f32[1,10], index: 6, kind: input, shape index: {}]   ;;  %s5033_s7 = inlined_call_operand.hbm [shape: f32[16,10], index: 7, kind: output, shape index: {}]  }
   0x1   :  { %13 = vsyncpa [#allocation4], 0  ;;  %s24_s26 = sshll.u32 %s5029_s3, 4  ;;  %s4283_s27 = smov [#allocation2]   ;;  %s25_s26 = int_to_ptr.hbm [resolvable:$true] %s24_s26 }
   0x2   :  { %s26_s28 = sshll.u32 %s4283_s27, 4  ;;  %s4284_s29 = smov 640   ;;  %s27_s28 = int_to_ptr.vmem [resolvable:$true] %s26_s28 }
   0x3   :  { %s4285_s30 = smov 40  }
   0x4   :  { %32 = dma.hbm_to_vmem [thread:$0]  %s25_s26, 20480, %s27_s28, [#allocation3], %s4284_s29, %s4284_s29, %s4285_s30  }
   0x5   :  { %4279 = dma.done.wait [#allocation3], 20480  }
   0x6   :  { %4280 = vsyncadd [#allocation3], 4294946816  ;;  %v2729_v0 = vld [vmem:[%s5027_s1 + $0x70] sm:$0xf]  ;;  %v3935_v1 = vld [vmem:[%s5027_s1 + $0x74] sm:$0xf0] }
   0x7   :  { %v2793_v2 = vld [vmem:[%s5027_s1 + $0xf0] sm:$0xf]  ;;  %v2730_v3 = vor.u32 %v3935_v1, %v2729_v0  ;;  %v3951_v4 = vld [vmem:[%s5027_s1 + $0xf4] sm:$0xf0]  ;;  %v3934_v5 = vld [vmem:[%s5027_s1 + $0x74] sm:$0xf] }
   0x8   :  { %v2731_v6 = vld [vmem:[%s5027_s1 + $0x78] sm:$0xf0]  ;;  %v2794_v7 = vor.u32 %v3951_v4, %v2793_v2  ;;  %v3950_v9 = vld [vmem:[%s5027_s1 + $0xf4] sm:$0xf]  ;;  %v2721_v11 = vld [vmem:[%s5027_s1 + $0x60] sm:$0xf] }
   0x9   :  { %v2734_v8 = vor.u32 %v3934_v5, %v2731_v6  ;;  %v2795_v10 = vld [vmem:[%s5027_s1 + $0xf8] sm:$0xf0]  ;;  %247 = vmatpush.bf16.msra.mxu0 %v2730_v3  ;;  %v3933_v13 = vld [vmem:[%s5027_s1 + $0x64] sm:$0xf0]  ;;  %v2785_v14 = vld [vmem:[%s5027_s1 + $0xe0] sm:$0xf] }
   0xa   :  { %v2798_v12 = vor.u32 %v3950_v9, %v2795_v10  ;;  %v3949_v15 = vld [vmem:[%s5027_s1 + $0xe4] sm:$0xf0]  ;;  %261 = vmatpush.bf16.msra.mxu1 %v2794_v7  ;;  %v2722_v16 = vor.u32 %v3933_v13, %v2721_v11  ;;  %v3932_v18 = vld [vmem:[%s5027_s1 + $0x64] sm:$0xf]  ;;  %v2723_v19 = vld [vmem:[%s5027_s1 + $0x68] sm:$0xf0] }
   0xb   :  { %275 = vmatpush.bf16.msra.mxu2 %v2734_v8  ;;  %v2786_v17 = vor.u32 %v3949_v15, %v2785_v14  ;;  %v3948_v20 = vld [vmem:[%s5027_s1 + $0xe4] sm:$0xf]  ;;  %v2726_v21 = vor.u32 %v3932_v18, %v2723_v19  ;;  %v2787_v22 = vld [vmem:[%s5027_s1 + $0xe8] sm:$0xf0]  ;;  %v2713_v23 = vld [vmem:[%s5027_s1 + $0x50] sm:$0xf] }
   0xc   :  { %289 = vmatpush.bf16.msra.mxu3 %v2798_v12  ;;  %v3931_v24 = vld [vmem:[%s5027_s1 + $0x54] sm:$0xf0]  ;;  %v2790_v25 = vor.u32 %v3948_v20, %v2787_v22  ;;  %v2777_v26 = vld [vmem:[%s5027_s1 + $0xd0] sm:$0xf]  ;;  %v3930_v28 = vld [vmem:[%s5027_s1 + $0x54] sm:$0xf] }
   0xd   :  { %v3947_v27 = vld [vmem:[%s5027_s1 + $0xd4] sm:$0xf0]  ;;  %248 = vmatpush.bf16.msra.mxu0 %v2722_v16  ;;  %v2714_v29 = vor.u32 %v3931_v24, %v2713_v23  ;;  %v2715_v30 = vld [vmem:[%s5027_s1 + $0x58] sm:$0xf0]  ;;  %v3946_v31 = vld [vmem:[%s5027_s1 + $0xd4] sm:$0xf] }
   0xe   :  { %v2779_v32 = vld [vmem:[%s5027_s1 + $0xd8] sm:$0xf0]  ;;  %262 = vmatpush.bf16.msra.mxu1 %v2786_v17  ;;  %v2778_v33 = vor.u32 %v3947_v27, %v2777_v26  ;;  %v2718_v34 = vor.u32 %v3930_v28, %v2715_v30  ;;  %v2705_v35 = vld [vmem:[%s5027_s1 + $0x40] sm:$0xf]  ;;  %v3929_v36 = vld [vmem:[%s5027_s1 + $0x44] sm:$0xf0] }
   0xf   :  { %276 = vmatpush.bf16.msra.mxu2 %v2726_v21  ;;  %v2769_v37 = vld [vmem:[%s5027_s1 + $0xc0] sm:$0xf]  ;;  %v2782_v38 = vor.u32 %v3946_v31, %v2779_v32  ;;  %v3945_v39 = vld [vmem:[%s5027_s1 + $0xc4] sm:$0xf0]  ;;  %v3928_v40 = vld [vmem:[%s5027_s1 + $0x44] sm:$0xf]  ;;  %v2706_v44 = vor.u32 %v3929_v36, %v2705_v35 }
  0x10   :  { %290 = vmatpush.bf16.msra.mxu3 %v2790_v25  ;;  %v2707_v41 = vld [vmem:[%s5027_s1 + $0x48] sm:$0xf0]  ;;  %v3944_v42 = vld [vmem:[%s5027_s1 + $0xc4] sm:$0xf]  ;;  %v2770_v45 = vor.u32 %v3945_v39, %v2769_v37  ;;  %v2697_v47 = vld [vmem:[%s5027_s1 + $0x30] sm:$0xf] }
  0x11   :  { %v2771_v43 = vld [vmem:[%s5027_s1 + $0xc8] sm:$0xf0]  ;;  %249 = vmatpush.bf16.msra.mxu0 %v2714_v29  ;;  %v2710_v46 = vor.u32 %v3928_v40, %v2707_v41  ;;  %v3927_v48 = vld [vmem:[%s5027_s1 + $0x34] sm:$0xf0]  ;;  %v2761_v49 = vld [vmem:[%s5027_s1 + $0xb0] sm:$0xf] }
  0x12   :  { %263 = vmatpush.bf16.msra.mxu1 %v2778_v33  ;;  %v2774_v50 = vor.u32 %v3944_v42, %v2771_v43  ;;  %v3943_v51 = vld [vmem:[%s5027_s1 + $0xb4] sm:$0xf0]  ;;  %v3926_v52 = vld [vmem:[%s5027_s1 + $0x34] sm:$0xf]  ;;  %v2699_v53 = vld [vmem:[%s5027_s1 + $0x38] sm:$0xf0]  ;;  %v2698_v56 = vor.u32 %v3927_v48, %v2697_v47 }
  0x13   :  { %277 = vmatpush.bf16.msra.mxu2 %v2718_v34  ;;  %v3942_v54 = vld [vmem:[%s5027_s1 + $0xb4] sm:$0xf]  ;;  %v2763_v55 = vld [vmem:[%s5027_s1 + $0xb8] sm:$0xf0]  ;;  %v2762_v57 = vor.u32 %v3943_v51, %v2761_v49  ;;  %v2702_v58 = vor.u32 %v3926_v52, %v2699_v53  ;;  %v2689_v59 = vld [vmem:[%s5027_s1 + $0x20] sm:$0xf] }
  0x14   :  { %291 = vmatpush.bf16.msra.mxu3 %v2782_v38  ;;  %v3925_v60 = vld [vmem:[%s5027_s1 + $0x24] sm:$0xf0]  ;;  %v2753_v61 = vld [vmem:[%s5027_s1 + $0xa0] sm:$0xf]  ;;  %v2766_v62 = vor.u32 %v3942_v54, %v2763_v55  ;;  %v3924_v0 = vld [vmem:[%s5027_s1 + $0x24] sm:$0xf] }
  0x15   :  { %250 = vmatpush.bf16.msra.mxu0 %v2706_v44  ;;  %v3941_v63 = vld [vmem:[%s5027_s1 + $0xa4] sm:$0xf0]  ;;  %v2691_v1 = vld [vmem:[%s5027_s1 + $0x28] sm:$0xf0]  ;;  %v3940_v2 = vld [vmem:[%s5027_s1 + $0xa4] sm:$0xf]  ;;  %v2690_v4 = vor.u32 %v3925_v60, %v2689_v59 }
  0x16   :  { %264 = vmatpush.bf16.msra.mxu1 %v2770_v45  ;;  %v2755_v3 = vld [vmem:[%s5027_s1 + $0xa8] sm:$0xf0]  ;;  %v2754_v5 = vor.u32 %v3941_v63, %v2753_v61  ;;  %v2694_v6 = vor.u32 %v3924_v0, %v2691_v1  ;;  %v2681_v7 = vld [vmem:[%s5027_s1 + $0x10] sm:$0xf]  ;;  %v3923_v8 = vld [vmem:[%s5027_s1 + $0x14] sm:$0xf0] }
  0x17   :  { %278 = vmatpush.bf16.msra.mxu2 %v2710_v46  ;;  %v2745_v9 = vld [vmem:[%s5027_s1 + $0x90] sm:$0xf]  ;;  %v2758_v10 = vor.u32 %v3940_v2, %v2755_v3  ;;  %v3939_v11 = vld [vmem:[%s5027_s1 + $0x94] sm:$0xf0]  ;;  %v3922_v12 = vld [vmem:[%s5027_s1 + $0x14] sm:$0xf]  ;;  %v2682_v16 = vor.u32 %v3923_v8, %v2681_v7 }
  0x18   :  { %292 = vmatpush.bf16.msra.mxu3 %v2774_v50  ;;  %v2683_v13 = vld [vmem:[%s5027_s1 + $0x18] sm:$0xf0]  ;;  %v3938_v14 = vld [vmem:[%s5027_s1 + $0x94] sm:$0xf]  ;;  %v2673_v17 = vld [vmem:[%s5027_s1] sm:$0xf]  ;;  %v2746_v19 = vor.u32 %v3939_v11, %v2745_v9 }
  0x19   :  { %251 = vmatpush.bf16.msra.mxu0 %v2698_v56  ;;  %v2747_v15 = vld [vmem:[%s5027_s1 + $0x98] sm:$0xf0]  ;;  %v3921_v18 = vld [vmem:[%s5027_s1 + $0x4] sm:$0xf0]  ;;  %v2686_v20 = vor.u32 %v3922_v12, %v2683_v13  ;;  %v2737_v21 = vld [vmem:[%s5027_s1 + $0x80] sm:$0xf] }
  0x1a   :  { %265 = vmatpush.bf16.msra.mxu1 %v2762_v57  ;;  %v3937_v22 = vld [vmem:[%s5027_s1 + $0x84] sm:$0xf0]  ;;  %v3920_v23 = vld [vmem:[%s5027_s1 + $0x4] sm:$0xf]  ;;  %v2750_v24 = vor.u32 %v3938_v14, %v2747_v15  ;;  %v2675_v25 = vld [vmem:[%s5027_s1 + $0x8] sm:$0xf0]  ;;  %v2674_v31 = vor.u32 %v3921_v18, %v2673_v17 }
  0x1b   :  { %279 = vmatpush.bf16.msra.mxu2 %v2702_v58  ;;  %v3936_v26 = vld [vmem:[%s5027_s1 + $0x84] sm:$0xf]  ;;  %v2739_v27 = vld [vmem:[%s5027_s1 + $0x88] sm:$0xf0]  ;;  %v2890_v29 = vld [vmem:[%s5027_s1 + $0x170] sm:$0xf]  ;;  %v2738_v35 = vor.u32 %v3937_v22, %v2737_v21  ;;  %v2678_v36 = vor.u32 %v3920_v23, %v2675_v25 }
  0x1c   :  { %293 = vmatpush.bf16.msra.mxu3 %v2766_v62  ;;  %v43_v28 = vld [vmem:[%s5026_s0] sm:$0xff]  ;;  %v3967_v30 = vld [vmem:[%s5027_s1 + $0x174] sm:$0xf0]  ;;  %v45_v32 = vld [vmem:[%s5026_s0 + $0x10] sm:$0xff]  ;;  %v2742_v39 = vor.u32 %v3936_v26, %v2739_v27  ;;  %vm2649_vm0 = vcmask 80896   ;;  %s2658_s10 = sshll.u32 %s5033_s7, 4  ;;  %s2659_s10 = int_to_ptr.hbm [resolvable:$true] %s2658_s10 }
  0x1d   :  { %252 = vmatpush.bf16.msra.mxu0 %v2690_v4  ;;  %v3966_v33 = vld [vmem:[%s5027_s1 + $0x174] sm:$0xf]  ;;  %v2892_v34 = vld [vmem:[%s5027_s1 + $0x178] sm:$0xf0]  ;;  %v44_v37 = vld [vmem:[%s5026_s0 + $0x8] sm:$0xff]  ;;  %v2891_v40 = vor.u32 %v3967_v30, %v2890_v29  ;;  %v47_v44 = vpack.c.bf16 %v45_v32, %v43_v28  ;;  %s4287_s11 = smov 128  }
  0x1e   :  { %266 = vmatpush.bf16.msra.mxu1 %v2754_v5  ;;  %v46_v38 = vld [vmem:[%s5026_s0 + $0x18] sm:$0xff]  ;;  %v2882_v41 = vld [vmem:[%s5027_s1 + $0x160] sm:$0xf]  ;;  %v2954_v42 = vld [vmem:[%s5027_s1 + $0x1f0] sm:$0xf]  ;;  %v2895_v45 = vor.u32 %v3966_v33, %v2892_v34  ;;  %s4288_s12 = smov 8  }
  0x1f   :  { %280 = vmatpush.bf16.msra.mxu2 %v2694_v6  ;;  %v3983_v43 = vld [vmem:[%s5027_s1 + $0x1f4] sm:$0xf0]  ;;  %v3965_v46 = vld [vmem:[%s5027_s1 + $0x164] sm:$0xf0]  ;;  %v3982_v47 = vld [vmem:[%s5027_s1 + $0x1f4] sm:$0xf]  ;;  %v48_v49 = vpack.c.bf16 %v46_v38, %v44_v37 }
  0x20   :  { %294 = vmatpush.bf16.msra.mxu3 %v2758_v10  ;;  %v2956_v48 = vld [vmem:[%s5027_s1 + $0x1f8] sm:$0xf0]  ;;  %v3964_v50 = vld [vmem:[%s5027_s1 + $0x164] sm:$0xf]  ;;  %v2884_v51 = vld [vmem:[%s5027_s1 + $0x168] sm:$0xf0]  ;;  %v2955_v52 = vor.u32 %v3983_v43, %v2954_v42  ;;  %v2883_v53 = vor.u32 %v3965_v46, %v2882_v41 }
  0x21   :  { %253 = vmatpush.bf16.msra.mxu0 %v2682_v16  ;;  %v2959_v54 = vor.u32 %v3982_v47, %v2956_v48  ;;  %v2874_v55 = vld [vmem:[%s5027_s1 + $0x150] sm:$0xf]  ;;  %v2946_v56 = vld [vmem:[%s5027_s1 + $0x1e0] sm:$0xf]  ;;  %v3981_v57 = vld [vmem:[%s5027_s1 + $0x1e4] sm:$0xf0]  ;;  %v2887_v58 = vor.u32 %v3964_v50, %v2884_v51 }
  0x22   :  { %267 = vmatpush.bf16.msra.mxu1 %v2746_v19  ;;  %v3963_v59 = vld [vmem:[%s5027_s1 + $0x154] sm:$0xf0]  ;;  %v3980_v60 = vld [vmem:[%s5027_s1 + $0x1e4] sm:$0xf]  ;;  %v2948_v61 = vld [vmem:[%s5027_s1 + $0x1e8] sm:$0xf0]  ;;  %v2947_v0 = vor.u32 %v3981_v57, %v2946_v56 }
  0x23   :  { %281 = vmatpush.bf16.msra.mxu2 %v2686_v20  ;;  %v3962_v62 = vld [vmem:[%s5027_s1 + $0x154] sm:$0xf]  ;;  %v2876_v63 = vld [vmem:[%s5027_s1 + $0x158] sm:$0xf0]  ;;  %v2875_v1 = vor.u32 %v3963_v59, %v2874_v55  ;;  %v2951_v2 = vor.u32 %v3980_v60, %v2948_v61  ;;  %v2866_v4 = vld [vmem:[%s5027_s1 + $0x140] sm:$0xf] }
  0x24   :  { %295 = vmatpush.bf16.msra.mxu3 %v2750_v24  ;;  %v2879_v3 = vor.u32 %v3962_v62, %v2876_v63  ;;  %v3961_v5 = vld [vmem:[%s5027_s1 + $0x144] sm:$0xf0]  ;;  %v3960_v6 = vld [vmem:[%s5027_s1 + $0x144] sm:$0xf]  ;;  %v2868_v7 = vld [vmem:[%s5027_s1 + $0x148] sm:$0xf0] }
  0x25   :  { %254 = vmatpush.bf16.msra.mxu0 %v2674_v31  ;;  %v2867_v8 = vor.u32 %v3961_v5, %v2866_v4  ;;  %v2871_v9 = vor.u32 %v3960_v6, %v2868_v7  ;;  %v2938_v10 = vld [vmem:[%s5027_s1 + $0x1d0] sm:$0xf]  ;;  %v3979_v11 = vld [vmem:[%s5027_s1 + $0x1d4] sm:$0xf0]  ;;  %v3978_v12 = vld [vmem:[%s5027_s1 + $0x1d4] sm:$0xf] }
  0x26   :  { %268 = vmatpush.bf16.msra.mxu1 %v2738_v35  ;;  %v2939_v13 = vor.u32 %v3979_v11, %v2938_v10  ;;  %v2940_v14 = vld [vmem:[%s5027_s1 + $0x1d8] sm:$0xf0]  ;;  %v2858_v16 = vld [vmem:[%s5027_s1 + $0x130] sm:$0xf]  ;;  %v3959_v17 = vld [vmem:[%s5027_s1 + $0x134] sm:$0xf0] }
  0x27   :  { %282 = vmatpush.bf16.msra.mxu2 %v2678_v36  ;;  %v2943_v15 = vor.u32 %v3978_v12, %v2940_v14  ;;  %v3958_v18 = vld [vmem:[%s5027_s1 + $0x134] sm:$0xf]  ;;  %v2859_v19 = vor.u32 %v3959_v17, %v2858_v16  ;;  %v2860_v20 = vld [vmem:[%s5027_s1 + $0x138] sm:$0xf0]  ;;  %v2930_v22 = vld [vmem:[%s5027_s1 + $0x1c0] sm:$0xf] }
  0x28   :  { %296 = vmatpush.bf16.msra.mxu3 %v2742_v39  ;;  %255 = vmatmul.bf16.vlgmr.msra.gmra.mxu0 %v47_v44  ;;  %v2863_v21 = vor.u32 %v3958_v18, %v2860_v20  ;;  %v3977_v23 = vld [vmem:[%s5027_s1 + $0x1c4] sm:$0xf0]  ;;  %v3976_v24 = vld [vmem:[%s5027_s1 + $0x1c4] sm:$0xf]  ;;  %v2932_v26 = vld [vmem:[%s5027_s1 + $0x1c8] sm:$0xf0] }
  0x29   :  { %509 = vmatpush.bf16.msrb.mxu0 %v2891_v40  ;;  %269 = vmatmul.bf16.vlgmr.msra.gmra.mxu1 %v48_v49  ;;  %v2931_v25 = vor.u32 %v3977_v23, %v2930_v22  ;;  %v2935_v27 = vor.u32 %v3976_v24, %v2932_v26  ;;  %v2850_v28 = vld [vmem:[%s5027_s1 + $0x120] sm:$0xf]  ;;  %v3957_v29 = vld [vmem:[%s5027_s1 + $0x124] sm:$0xf0]  ;;  %v3956_v31 = vld [vmem:[%s5027_s1 + $0x124] sm:$0xf] }
  0x2a   :  { %283 = vmatmul.bf16.vlgmr.msra.gmra.mxu2 %v47_v44  ;;  %523 = vmatpush.bf16.msrb.mxu1 %v2955_v52  ;;  %v2851_v30 = vor.u32 %v3957_v29, %v2850_v28  ;;  %v2852_v32 = vld [vmem:[%s5027_s1 + $0x128] sm:$0xf0]  ;;  %v2922_v34 = vld [vmem:[%s5027_s1 + $0x1b0] sm:$0xf]  ;;  %v3975_v35 = vld [vmem:[%s5027_s1 + $0x1b4] sm:$0xf0] }
  0x2b   :  { %537 = vmatpush.bf16.msrb.mxu2 %v2895_v45  ;;  %297 = vmatmul.bf16.vlgmr.msra.gmra.mxu3 %v48_v49  ;;  %v2855_v33 = vor.u32 %v3956_v31, %v2852_v32  ;;  %v3974_v36 = vld [vmem:[%s5027_s1 + $0x1b4] sm:$0xf]  ;;  %v2923_v37 = vor.u32 %v3975_v35, %v2922_v34  ;;  %v2924_v38 = vld [vmem:[%s5027_s1 + $0x1b8] sm:$0xf0]  ;;  %v2842_v40 = vld [vmem:[%s5027_s1 + $0x110] sm:$0xf] }
  0x2c   :  { %551 = vmatpush.bf16.msrb.mxu3 %v2959_v54  ;;  %v2927_v39 = vor.u32 %v3974_v36, %v2924_v38  ;;  %v3955_v41 = vld [vmem:[%s5027_s1 + $0x114] sm:$0xf0]  ;;  %v3954_v42 = vld [vmem:[%s5027_s1 + $0x114] sm:$0xf]  ;;  %v2844_v44 = vld [vmem:[%s5027_s1 + $0x118] sm:$0xf0] }
  0x2d   :  { %510 = vmatpush.bf16.msrb.mxu0 %v2883_v53  ;;  %v2843_v43 = vor.u32 %v3955_v41, %v2842_v40  ;;  %v2847_v45 = vor.u32 %v3954_v42, %v2844_v44  ;;  %v2914_v46 = vld [vmem:[%s5027_s1 + $0x1a0] sm:$0xf]  ;;  %v3973_v47 = vld [vmem:[%s5027_s1 + $0x1a4] sm:$0xf0]  ;;  %v3972_v48 = vld [vmem:[%s5027_s1 + $0x1a4] sm:$0xf] }
  0x2e   :  { %524 = vmatpush.bf16.msrb.mxu1 %v2947_v0  ;;  %v2915_v49 = vor.u32 %v3973_v47, %v2914_v46  ;;  %v2916_v50 = vld [vmem:[%s5027_s1 + $0x1a8] sm:$0xf0]  ;;  %v2834_v52 = vld [vmem:[%s5027_s1 + $0x100] sm:$0xf]  ;;  %v3953_v53 = vld [vmem:[%s5027_s1 + $0x104] sm:$0xf0] }
  0x2f   :  { %538 = vmatpush.bf16.msrb.mxu2 %v2887_v58  ;;  %v2919_v51 = vor.u32 %v3972_v48, %v2916_v50  ;;  %v3952_v54 = vld [vmem:[%s5027_s1 + $0x104] sm:$0xf]  ;;  %v2835_v55 = vor.u32 %v3953_v53, %v2834_v52  ;;  %v2836_v56 = vld [vmem:[%s5027_s1 + $0x108] sm:$0xf0]  ;;  %v2906_v58 = vld [vmem:[%s5027_s1 + $0x190] sm:$0xf] }
  0x30   :  { %552 = vmatpush.bf16.msrb.mxu3 %v2951_v2  ;;  %v2839_v57 = vor.u32 %v3952_v54, %v2836_v56  ;;  %v3971_v59 = vld [vmem:[%s5027_s1 + $0x194] sm:$0xf0]  ;;  %v3970_v60 = vld [vmem:[%s5027_s1 + $0x194] sm:$0xf]  ;;  %v2908_v62 = vld [vmem:[%s5027_s1 + $0x198] sm:$0xf0] }
  0x31   :  { %511 = vmatpush.bf16.msrb.mxu0 %v2875_v1  ;;  %v2907_v61 = vor.u32 %v3971_v59, %v2906_v58  ;;  %v2911_v63 = vor.u32 %v3970_v60, %v2908_v62  ;;  %v2898_v0 = vld [vmem:[%s5027_s1 + $0x180] sm:$0xf]  ;;  %v3969_v1 = vld [vmem:[%s5027_s1 + $0x184] sm:$0xf0]  ;;  %v3968_v2 = vld [vmem:[%s5027_s1 + $0x184] sm:$0xf] }
  0x32   :  { %525 = vmatpush.bf16.msrb.mxu1 %v2939_v13  ;;  %v2900_v4 = vld [vmem:[%s5027_s1 + $0x188] sm:$0xf0]  ;;  %v3242_v6 = vld [vmem:[#allocation2 + $0x230] sm:$0xf]  ;;  %v4059_v7 = vld [vmem:[#allocation2 + $0x254] sm:$0xf0] }
  0x33   :  { %539 = vmatpush.bf16.msrb.mxu2 %v2879_v3  ;;  %v2899_v3 = vor.u32 %v3969_v1, %v2898_v0  ;;  %v2903_v5 = vor.u32 %v3968_v2, %v2900_v4  ;;  %v3244_v10 = vld [vmem:[#allocation2 + $0x258] sm:$0xf0]  ;;  %v3202_v11 = vld [vmem:[#allocation2 + $0x1e0] sm:$0xf]  ;;  %v4049_v12 = vld [vmem:[#allocation2 + $0x204] sm:$0xf0] }
  0x34   :  { %553 = vmatpush.bf16.msrb.mxu3 %v2943_v15  ;;  %v4731_v13 = vld [vmem:[%s5028_s2] sm:$0x3]  ;;  %v4044_v15 = vld [vmem:[#allocation2 + $0x1e4] sm:$0xf]  ;;  %v3204_v16 = vld [vmem:[#allocation2 + $0x208] sm:$0xf0]  ;;  %v3203_v18 = vor.u32 %v4049_v12, %v3202_v11 }
  0x35   :  { %512 = vmatpush.bf16.msrb.mxu0 %v2867_v8  ;;  %v4054_v8 = vld [vmem:[#allocation2 + $0x234] sm:$0xf]  ;;  %v3562_v17 = vld [vmem:[#allocation2 + $0x4b0] sm:$0xf]  ;;  %v3207_v22 = vor.u32 %v4044_v15, %v3204_v16  ;;  %v4039_v26 = vld [vmem:[#allocation2 + $0x1b4] sm:$0xf0] }
  0x36   :  { %526 = vmatpush.bf16.msrb.mxu1 %v2931_v25  ;;  %v3247_v14 = vor.u32 %v4054_v8, %v3244_v10  ;;  %v4134_v20 = vld [vmem:[#allocation2 + $0x4b4] sm:$0xf]  ;;  %v3162_v25 = vld [vmem:[#allocation2 + $0x190] sm:$0xf]  ;;  %v3164_v28 = vld [vmem:[#allocation2 + $0x1b8] sm:$0xf0] }
  0x37   :  { %540 = vmatpush.bf16.msrb.mxu2 %v2871_v9  ;;  %v3243_v9 = vor.u32 %v4059_v7, %v3242_v6  ;;  %v3522_v29 = vld [vmem:[#allocation2 + $0x460] sm:$0xf]  ;;  %v4124_v32 = vld [vmem:[#allocation2 + $0x464] sm:$0xf]  ;;  %v83_v34 = vperm.slane %v4731_v13, 0  ;;  %v3163_v35 = vor.u32 %v4039_v26, %v3162_v25 }
  0x38   :  { %554 = vmatpush.bf16.msrb.mxu3 %v2935_v27  ;;  %v4034_v27 = vld [vmem:[#allocation2 + $0x194] sm:$0xf]  ;;  %v4029_v38 = vld [vmem:[#allocation2 + $0x164] sm:$0xf0]  ;;  %v3482_v41 = vld [vmem:[#allocation2 + $0x410] sm:$0xf] }
  0x39   :  { %513 = vmatpush.bf16.msrb.mxu0 %v2859_v19  ;;  %v4139_v19 = vld [vmem:[#allocation2 + $0x4d4] sm:$0xf0]  ;;  %v3167_v40 = vor.u32 %v4034_v27, %v3164_v28  ;;  %v3124_v46 = vld [vmem:[#allocation2 + $0x168] sm:$0xf0]  ;;  %v3484_v47 = vld [vmem:[#allocation2 + $0x438] sm:$0xf0] }
  0x3a   :  { %527 = vmatpush.bf16.msrb.mxu1 %v2923_v37  ;;  %v3563_v23 = vor.u32 %v4139_v19, %v3562_v17  ;;  %v3122_v37 = vld [vmem:[#allocation2 + $0x140] sm:$0xf]  ;;  %v4119_v42 = vld [vmem:[#allocation2 + $0x434] sm:$0xf0]  ;;  %v4109_v52 = vld [vmem:[#allocation2 + $0x3e4] sm:$0xf0] }
  0x3b   :  { %541 = vmatpush.bf16.msrb.mxu2 %v2863_v21  ;;  %v3564_v21 = vld [vmem:[#allocation2 + $0x4d8] sm:$0xf0]  ;;  %v3483_v48 = vor.u32 %v4119_v42, %v3482_v41  ;;  %v3442_v50 = vld [vmem:[#allocation2 + $0x3c0] sm:$0xf]  ;;  %v4104_v53 = vld [vmem:[#allocation2 + $0x3c4] sm:$0xf] }
  0x3c   :  { %555 = vmatpush.bf16.msrb.mxu3 %v2927_v39  ;;  %v3567_v24 = vor.u32 %v4134_v20, %v3564_v21  ;;  %v3444_v54 = vld [vmem:[#allocation2 + $0x3e8] sm:$0xf0]  ;;  %v3082_v56 = vld [vmem:[#allocation2 + $0xf0] sm:$0xf]  ;;  %v4014_v59 = vld [vmem:[#allocation2 + $0xf4] sm:$0xf] }
  0x3d   :  { %514 = vmatpush.bf16.msrb.mxu0 %v2851_v30  ;;  %v4129_v30 = vld [vmem:[#allocation2 + $0x484] sm:$0xf0]  ;;  %v3084_v60 = vld [vmem:[#allocation2 + $0x118] sm:$0xf0]  ;;  %v3447_v62 = vor.u32 %v4104_v53, %v3444_v54  ;;  %v4099_v2 = vld [vmem:[#allocation2 + $0x394] sm:$0xf0] }
  0x3e   :  { %528 = vmatpush.bf16.msrb.mxu1 %v2915_v49  ;;  %v3523_v31 = vor.u32 %v4129_v30, %v3522_v29  ;;  %v3404_v4 = vld [vmem:[#allocation2 + $0x398] sm:$0xf0]  ;;  %v3087_v8 = vor.u32 %v4014_v59, %v3084_v60  ;;  %v4009_v10 = vld [vmem:[#allocation2 + $0xc4] sm:$0xf0]  ;;  %v3044_v15 = vld [vmem:[#allocation2 + $0xc8] sm:$0xf0] }
  0x3f   :  { %542 = vmatpush.bf16.msrb.mxu2 %v2855_v33  ;;  %v3524_v33 = vld [vmem:[#allocation2 + $0x488] sm:$0xf0]  ;;  %v3362_v19 = vld [vmem:[#allocation2 + $0x320] sm:$0xf]  ;;  %v3002_v26 = vld [vmem:[#allocation2 + $0x50] sm:$0xf] }
  0x40   :  { %556 = vmatpush.bf16.msrb.mxu3 %v2919_v51  ;;  %v3527_v36 = vor.u32 %v4124_v32, %v3524_v33  ;;  %v3123_v51 = vor.u32 %v4029_v38, %v3122_v37  ;;  %v3999_v27 = vld [vmem:[#allocation2 + $0x74] sm:$0xf0]  ;;  %v3994_v30 = vld [vmem:[#allocation2 + $0x54] sm:$0xf]  ;;  %v3252_v53 = vld [vmem:[#allocation2 + $0x260] sm:$0xf0] }
  0x41   :  { %515 = vmatpush.bf16.msrb.mxu0 %v2843_v43  ;;  %v4114_v43 = vld [vmem:[#allocation2 + $0x414] sm:$0xf]  ;;  %v3003_v37 = vor.u32 %v3999_v27, %v3002_v26  ;;  %v4079_v38 = vld [vmem:[#allocation2 + $0x2f4] sm:$0xf0]  ;;  %v4064_v59 = vld [vmem:[#allocation2 + $0x284] sm:$0xf] }
  0x42   :  { %529 = vmatpush.bf16.msrb.mxu1 %v2907_v61  ;;  %v3487_v49 = vor.u32 %v4114_v43, %v3484_v47  ;;  %v3443_v61 = vor.u32 %v4109_v52, %v3442_v50  ;;  %v4060_v50 = vld [vmem:[#allocation2 + $0x25c] sm:$0xf0]  ;;  %v4055_v52 = vld [vmem:[#allocation2 + $0x23c] sm:$0xf]  ;;  %v3284_v60 = vld [vmem:[#allocation2 + $0x2a8] sm:$0xf0] }
  0x43   :  { %543 = vmatpush.bf16.msrb.mxu2 %v2847_v45  ;;  %v4024_v45 = vld [vmem:[#allocation2 + $0x144] sm:$0xf]  ;;  %v3532_v27 = vld [vmem:[#allocation2 + $0x490] sm:$0xf0] }
  0x44   :  { %557 = vmatpush.bf16.msrb.mxu3 %v2911_v63  ;;  %v3402_v63 = vld [vmem:[#allocation2 + $0x370] sm:$0xf] }
  0x45   :  { %516 = vmatpush.bf16.msrb.mxu0 %v2835_v55  ;;  %v3127_v55 = vor.u32 %v4024_v45, %v3124_v46  ;;  %v3403_v17 = vor.u32 %v4099_v2, %v3402_v63  ;;  %v3989_v45 = vld [vmem:[#allocation2 + $0x24] sm:$0xf0]  ;;  %v3984_v46 = vld [vmem:[#allocation2 + $0x4] sm:$0xf]  ;;  %v3570_v63 = vld [vmem:[#allocation2 + $0x4b8] sm:$0xf] }
  0x46   :  { %530 = vmatpush.bf16.msrb.mxu1 %v2899_v3  ;;  %v4094_v3 = vld [vmem:[#allocation2 + $0x374] sm:$0xf] }
  0x47   :  { %544 = vmatpush.bf16.msrb.mxu2 %v2839_v57  ;;  %v4019_v57 = vld [vmem:[#allocation2 + $0x114] sm:$0xf0] }
  0x48   :  { %558 = vmatpush.bf16.msrb.mxu3 %v2903_v5  ;;  %v3083_v1 = vor.u32 %v4019_v57, %v3082_v56  ;;  %v84_v5 = vperm.slane %v4731_v13, 1  ;;  %v4089_v13 = vld [vmem:[#allocation2 + $0x344] sm:$0xf0]  ;;  %v3282_v56 = vld [vmem:[#allocation2 + $0x280] sm:$0xf] }
  0x49   :  { %1555 = vmatpush.bf16.msra.mxu0 %v3243_v9  ;;  %v3042_v9 = vld [vmem:[#allocation2 + $0xa0] sm:$0xf]  ;;  %v3363_v32 = vor.u32 %v4089_v13, %v3362_v19  ;;  %v3172_v13 = vld [vmem:[#allocation2 + $0x1c0] sm:$0xf0] }
  0x4a   :  { %1569 = vmatpush.bf16.msra.mxu1 %v3563_v23  ;;  %v3043_v21 = vor.u32 %v4009_v10, %v3042_v9  ;;  %v3364_v23 = vld [vmem:[#allocation2 + $0x348] sm:$0xf0]  ;;  %v4040_v19 = vld [vmem:[#allocation2 + $0x1bc] sm:$0xf0] }
  0x4b   :  { %1583 = vmatpush.bf16.msra.mxu2 %v3247_v14  ;;  %v4004_v14 = vld [vmem:[#allocation2 + $0xa4] sm:$0xf]  ;;  %v4045_v10 = vld [vmem:[#allocation2 + $0x1ec] sm:$0xf] }
  0x4c   :  { %1597 = vmatpush.bf16.msra.mxu3 %v3567_v24  ;;  %v3047_v25 = vor.u32 %v4004_v14, %v3044_v15 }
  0x4d   :  { %1556 = vmatpush.bf16.msra.mxu0 %v3203_v18  ;;  %v3407_v18 = vor.u32 %v4094_v3, %v3404_v4  ;;  %v4135_v3 = vld [vmem:[#allocation2 + $0x4bc] sm:$0xf]  ;;  %v3572_v4 = vld [vmem:[#allocation2 + $0x4e0] sm:$0xf0] }
  0x4e   :  { %1570 = vmatpush.bf16.msra.mxu1 %v3523_v31  ;;  %v3004_v31 = vld [vmem:[#allocation2 + $0x78] sm:$0xf0]  ;;  %v3575_v15 = vor.u32 %v4135_v3, %v3572_v4 }
  0x4f   :  { %1584 = vmatpush.bf16.msra.mxu2 %v3207_v22  ;;  %v4084_v22 = vld [vmem:[#allocation2 + $0x324] sm:$0xf]  ;;  %v3007_v43 = vor.u32 %v3994_v30, %v3004_v31  ;;  %v3995_v3 = vld [vmem:[#allocation2 + $0x5c] sm:$0xf] }
  0x50   :  { %1598 = vmatpush.bf16.msra.mxu3 %v3527_v36  ;;  %v3367_v33 = vor.u32 %v4084_v22, %v3364_v23  ;;  %v3530_v23 = vld [vmem:[#allocation2 + $0x468] sm:$0xf] }
  0x51   :  { %1557 = vmatpush.bf16.msra.mxu0 %v3163_v35 }
  0x52   :  { %1571 = vmatpush.bf16.msra.mxu1 %v3483_v48  ;;  %v2964_v48 = vld [vmem:[#allocation2 + $0x28] sm:$0xf0] }
  0x53   :  { %1585 = vmatpush.bf16.msra.mxu2 %v3167_v40  ;;  %v3324_v40 = vld [vmem:[#allocation2 + $0x2f8] sm:$0xf0] }
  0x54   :  { %1599 = vmatpush.bf16.msra.mxu3 %v3487_v49  ;;  %v3250_v49 = vld [vmem:[#allocation2 + $0x238] sm:$0xf] }
  0x55   :  { %1558 = vmatpush.bf16.msra.mxu0 %v3123_v51  ;;  %v3251_v2 = vor.u32 %v4060_v50, %v3250_v49  ;;  %v4105_v49 = vld [vmem:[#allocation2 + $0x3cc] sm:$0xf] }
  0x56   :  { %1572 = vmatpush.bf16.msra.mxu1 %v3443_v61 }
  0x57   :  { %1586 = vmatpush.bf16.msra.mxu2 %v3127_v55 }
  0x58   :  { %1600 = vmatpush.bf16.msra.mxu3 %v3447_v62 }
  0x59   :  { %1559 = vmatpush.bf16.msra.mxu0 %v3083_v1  ;;  %v2967_v1 = vor.u32 %v3984_v46, %v2964_v48  ;;  %v4110_v48 = vld [vmem:[#allocation2 + $0x3ec] sm:$0xf0] }
  0x5a   :  { %1573 = vmatpush.bf16.msra.mxu1 %v3403_v17 }
  0x5b   :  { %1587 = vmatpush.bf16.msra.mxu2 %v3087_v8  ;;  %v4050_v8 = vld [vmem:[#allocation2 + $0x20c] sm:$0xf0] }
  0x5c   :  { %1601 = vmatpush.bf16.msra.mxu3 %v3407_v18  ;;  %v3170_v18 = vld [vmem:[#allocation2 + $0x198] sm:$0xf] }
  0x5d   :  { %1560 = vmatpush.bf16.msra.mxu0 %v3043_v21  ;;  %v3171_v21 = vor.u32 %v4040_v19, %v3170_v18  ;;  %v2972_v18 = vld [vmem:[#allocation2 + $0x30] sm:$0xf0] }
  0x5e   :  { %1574 = vmatpush.bf16.msra.mxu1 %v3363_v32  ;;  %v4025_v32 = vld [vmem:[#allocation2 + $0x14c] sm:$0xf] }
  0x5f   :  { %1588 = vmatpush.bf16.msra.mxu2 %v3047_v25  ;;  %v4125_v25 = vld [vmem:[#allocation2 + $0x46c] sm:$0xf] }
  0x60   :  { %1602 = vmatpush.bf16.msra.mxu3 %v3367_v33  ;;  %v3535_v30 = vor.u32 %v4125_v25, %v3532_v27  ;;  %v3132_v33 = vld [vmem:[#allocation2 + $0x170] sm:$0xf0]  ;;  %v3290_v25 = vld [vmem:[#allocation2 + $0x288] sm:$0xf] }
  0x61   :  { %1561 = vmatpush.bf16.msra.mxu0 %v3003_v37  ;;  %v4115_v37 = vld [vmem:[#allocation2 + $0x41c] sm:$0xf] }
  0x63   :  { %1589 = vmatpush.bf16.msra.mxu2 %v3007_v43 }
  0x67   :  { %1590 = vmatpush.bf16.msra.mxu2 %v2967_v1  ;;  %v3010_v1 = vld [vmem:[#allocation2 + $0x58] sm:$0xf] }
  0xa5   :  { %v256_v39 = vpop.f32.mrf.mxu0 }
  0xa6   :  { %v270_v44 = vpop.f32.mrf.mxu1  ;;  %v257_v58 = vadd.f32 %v256_v39, %v83_v34  ;;  %v4074_v39 = vld [vmem:[#allocation2 + $0x2d4] sm:$0xf] }
  0xa7   :  { %v3327_v55 = vor.u32 %v4074_v39, %v3324_v40  ;;  %v3492_v39 = vld [vmem:[#allocation2 + $0x440] sm:$0xf0] }
  0xa8   :  { %v271_v11 = vadd.f32 %v270_v44, %v257_v58  ;;  %v2962_v44 = vld [vmem:[#allocation2] sm:$0xf]  ;;  %v4069_v58 = vld [vmem:[#allocation2 + $0x2a4] sm:$0xf0]  ;;  %v3495_v40 = vor.u32 %v4115_v37, %v3492_v39 }
  0xa9   :  { %v2963_v57 = vor.u32 %v3989_v45, %v2962_v44  ;;  %1603 = vmatpush.bf16.msra.mxu3 %v3327_v55  ;;  %v3283_v9 = vor.u32 %v4069_v58, %v3282_v56  ;;  %v4015_v44 = vld [vmem:[#allocation2 + $0xfc] sm:$0xf]  ;;  %v3092_v45 = vld [vmem:[#allocation2 + $0x120] sm:$0xf0]  ;;  %v4005_v55 = vld [vmem:[#allocation2 + $0xac] sm:$0xf] }
  0xaa   :  { %v303_v28 = vmax.f32 %v271_v11, 0.0  ;;  %v3212_v11 = vld [vmem:[#allocation2 + $0x210] sm:$0xf0]  ;;  %v3095_v46 = vor.u32 %v4015_v44, %v3092_v45  ;;  %v4061_v45 = vld [vmem:[#allocation2 + $0x264] sm:$0xf0] }
  0xab   :  { %1562 = vmatpush.bf16.msra.mxu0 %v2963_v57  ;;  %v3215_v17 = vor.u32 %v4045_v10, %v3212_v11  ;;  %v3052_v57 = vld [vmem:[#allocation2 + $0xd0] sm:$0xf0] }
  0xac   :  { %v3055_v58 = vor.u32 %v4005_v55, %v3052_v57  ;;  %v3372_v11 = vld [vmem:[#allocation2 + $0x350] sm:$0xf0] }
  0xad   :  { %v284_v0 = vpop.f32.mrf.mxu2  ;;  %v258_v7 = vpop.f32.mrf.mxu0 }
  0xae   :  { %v298_v6 = vpop.f32.mrf.mxu3  ;;  %v259_v12 = vadd.f32 %v258_v7, %v83_v34  ;;  %v272_v16 = vpop.f32.mrf.mxu1  ;;  %v285_v24 = vadd.f32 %v284_v0, %v84_v5  ;;  %v3322_v34 = vld [vmem:[#allocation2 + $0x2d0] sm:$0xf]  ;;  %v4140_v0 = vld [vmem:[#allocation2 + $0x4dc] sm:$0xf0]  ;;  %v3210_v7 = vld [vmem:[#allocation2 + $0x1e8] sm:$0xf] }
  0xaf   :  { %v3323_v54 = vor.u32 %v4079_v38, %v3322_v34  ;;  %v3571_v14 = vor.u32 %v4140_v0, %v3570_v63  ;;  %v3135_v34 = vor.u32 %v4025_v32, %v3132_v33  ;;  %v3412_v63 = vld [vmem:[#allocation2 + $0x3a0] sm:$0xf0]  ;;  %v2831_v32 = vld [vmem:[%s5028_s2 + $0x2] sm:$0x3] }
  0xb0   :  { %v273_v20 = vadd.f32 %v272_v16, %v259_v12  ;;  %v299_v41 = vadd.f32 %v298_v6, %v285_v24  ;;  %v3255_v6 = vor.u32 %v4055_v52, %v3252_v53  ;;  %v3287_v12 = vor.u32 %v4064_v59, %v3284_v60  ;;  %v4130_v24 = vld [vmem:[#allocation2 + $0x48c] sm:$0xf0]  ;;  %v3050_v53 = vld [vmem:[#allocation2 + $0xa8] sm:$0xf]  ;;  %v3410_v59 = vld [vmem:[#allocation2 + $0x378] sm:$0xf] }
  0xb1   :  { %1575 = vmatpush.bf16.msra.mxu1 %v3323_v54  ;;  %v3211_v16 = vor.u32 %v4050_v8, %v3210_v7  ;;  %v3531_v26 = vor.u32 %v4130_v24, %v3530_v23  ;;  %v4010_v54 = vld [vmem:[#allocation2 + $0xcc] sm:$0xf0]  ;;  %v4100_v60 = vld [vmem:[#allocation2 + $0x39c] sm:$0xf0]  ;;  %v3370_v7 = vld [vmem:[#allocation2 + $0x328] sm:$0xf] }
  0xb2   :  { %v305_v29 = vmax.f32 %v273_v20, 0.0  ;;  %v304_v61 = vmax.f32 %v299_v41, 0.0  ;;  %1604 = vmatpush.bf16.msra.mxu3 %v3287_v12  ;;  %v4035_v20 = vld [vmem:[#allocation2 + $0x19c] sm:$0xf]  ;;  %v3090_v41 = vld [vmem:[#allocation2 + $0xf8] sm:$0xf]  ;;  %v3051_v56 = vor.u32 %v4010_v54, %v3050_v53 }
  0xb3   :  { %v3175_v22 = vor.u32 %v4035_v20, %v3172_v13  ;;  %v4090_v8 = vld [vmem:[#allocation2 + $0x34c] sm:$0xf0]  ;;  %v3330_v20 = vld [vmem:[#allocation2 + $0x2d8] sm:$0xf]  ;;  %v4075_v13 = vld [vmem:[#allocation2 + $0x2dc] sm:$0xf] }
  0xb4   :  { %v307_v35 = vpack.c.bf16 %v305_v29, %v303_v28  ;;  %v3130_v28 = vld [vmem:[#allocation2 + $0x148] sm:$0xf]  ;;  %v4030_v29 = vld [vmem:[#allocation2 + $0x16c] sm:$0xf0]  ;;  %v3371_v10 = vor.u32 %v4090_v8, %v3370_v7 }
  0xb5   :  { %v286_v36 = vpop.f32.mrf.mxu2  ;;  %1576 = vmatpush.bf16.msra.mxu1 %v3283_v9  ;;  %v3131_v31 = vor.u32 %v4030_v29, %v3130_v28  ;;  %v4085_v9 = vld [vmem:[#allocation2 + $0x32c] sm:$0xf]  ;;  %v3292_v29 = vld [vmem:[#allocation2 + $0x2b0] sm:$0xf0]  ;;  %v3218_v54 = vld [vmem:[#allocation2 + $0x1f0] sm:$0xf] }
  0xb6   :  { %v287_v42 = vadd.f32 %v286_v36, %v84_v5  ;;  %v300_v47 = vpop.f32.mrf.mxu3  ;;  %517 = vmatmul.bf16.vlgmr.msrb.gmra.mxu0 %v307_v35  ;;  %545 = vmatmul.bf16.vlgmr.msrb.gmra.mxu2 %v307_v35  ;;  %v3490_v35 = vld [vmem:[#allocation2 + $0x418] sm:$0xf]  ;;  %v4120_v36 = vld [vmem:[#allocation2 + $0x43c] sm:$0xf0]  ;;  %v3375_v12 = vor.u32 %v4085_v9, %v3372_v11  ;;  %v4065_v28 = vld [vmem:[#allocation2 + $0x28c] sm:$0xf] }
  0xb7   :  { %1611 = vmatpush.bf16.msrb.mxu0 %v3251_v2  ;;  %1639 = vmatpush.bf16.msrb.mxu2 %v3255_v6  ;;  %v3491_v38 = vor.u32 %v4120_v36, %v3490_v35  ;;  %v4000_v2 = vld [vmem:[#allocation2 + $0x7c] sm:$0xf0]  ;;  %v345_v35 = vperm.slane %v2831_v32, 0  ;;  %v4036_v9 = vld [vmem:[#allocation2 + $0x1a4] sm:$0xf] }
  0xb8   :  { %v301_v51 = vadd.f32 %v300_v47, %v287_v42  ;;  %v4020_v42 = vld [vmem:[#allocation2 + $0x11c] sm:$0xf0]  ;;  %v3450_v47 = vld [vmem:[#allocation2 + $0x3c8] sm:$0xf]  ;;  %v3011_v4 = vor.u32 %v4000_v2, %v3010_v1  ;;  %v4136_v1 = vld [vmem:[#allocation2 + $0x4c4] sm:$0xf] }
  0xb9   :  { %v3091_v43 = vor.u32 %v4020_v42, %v3090_v41  ;;  %v3451_v50 = vor.u32 %v4110_v48, %v3450_v47  ;;  %v3260_v47 = vld [vmem:[#allocation2 + $0x268] sm:$0xf0] }
  0xba   :  { %v306_v62 = vmax.f32 %v301_v51, 0.0  ;;  %v3452_v51 = vld [vmem:[#allocation2 + $0x3f0] sm:$0xf0]  ;;  %v3580_v2 = vld [vmem:[#allocation2 + $0x4e8] sm:$0xf0] }
  0xbb   :  { %1612 = vmatpush.bf16.msrb.mxu0 %v3211_v16  ;;  %1640 = vmatpush.bf16.msrb.mxu2 %v3215_v17  ;;  %v3455_v52 = vor.u32 %v4105_v49, %v3452_v51  ;;  %v3985_v16 = vld [vmem:[#allocation2 + $0xc] sm:$0xf] }
  0xbc   :  { %v308_v5 = vpack.c.bf16 %v306_v62, %v304_v61  ;;  %v4095_v61 = vld [vmem:[#allocation2 + $0x37c] sm:$0xf]  ;;  %v3411_v62 = vor.u32 %v4100_v60, %v3410_v59  ;;  %v2975_v19 = vor.u32 %v3985_v16, %v2972_v18  ;;  %v4046_v59 = vld [vmem:[#allocation2 + $0x1f4] sm:$0xf]  ;;  %v4131_v16 = vld [vmem:[#allocation2 + $0x494] sm:$0xf0] }
  0xbd   :  { %v3415_v0 = vor.u32 %v4095_v61, %v3412_v63  ;;  %v3220_v60 = vld [vmem:[#allocation2 + $0x218] sm:$0xf0] }
  0xbe   :  { %531 = vmatmul.bf16.vlgmr.msrb.gmra.mxu1 %v308_v5  ;;  %559 = vmatmul.bf16.vlgmr.msrb.gmra.mxu3 %v308_v5  ;;  %v3012_v5 = vld [vmem:[#allocation2 + $0x80] sm:$0xf0]  ;;  %v3540_v18 = vld [vmem:[#allocation2 + $0x498] sm:$0xf0] }
  0xbf   :  { %1625 = vmatpush.bf16.msrb.mxu1 %v3571_v14  ;;  %1653 = vmatpush.bf16.msrb.mxu3 %v3575_v15  ;;  %v3015_v6 = vor.u32 %v3995_v3, %v3012_v5  ;;  %v2970_v14 = vld [vmem:[#allocation2 + $0x8] sm:$0xf]  ;;  %v3990_v15 = vld [vmem:[#allocation2 + $0x2c] sm:$0xf0]  ;;  %v3178_v5 = vld [vmem:[#allocation2 + $0x1a0] sm:$0xf] }
  0xc0   :  { %1613 = vmatpush.bf16.msrb.mxu0 %v3171_v21  ;;  %1641 = vmatpush.bf16.msrb.mxu2 %v3175_v22  ;;  %v2971_v17 = vor.u32 %v3990_v15, %v2970_v14  ;;  %v4080_v21 = vld [vmem:[#allocation2 + $0x2fc] sm:$0xf0]  ;;  %v3332_v22 = vld [vmem:[#allocation2 + $0x300] sm:$0xf0]  ;;  %v3538_v14 = vld [vmem:[#allocation2 + $0x470] sm:$0xf] }
  0xc1   :  { %v3331_v23 = vor.u32 %v4080_v21, %v3330_v20  ;;  %v3335_v24 = vor.u32 %v4075_v13, %v3332_v22  ;;  %v3138_v21 = vld [vmem:[#allocation2 + $0x150] sm:$0xf]  ;;  %v4031_v13 = vld [vmem:[#allocation2 + $0x174] sm:$0xf0]  ;;  %v4026_v22 = vld [vmem:[#allocation2 + $0x154] sm:$0xf] }
  0xc3   :  { %1626 = vmatpush.bf16.msrb.mxu1 %v3531_v26  ;;  %1654 = vmatpush.bf16.msrb.mxu3 %v3535_v30  ;;  %v4070_v26 = vld [vmem:[#allocation2 + $0x2ac] sm:$0xf0]  ;;  %v3295_v30 = vor.u32 %v4065_v28, %v3292_v29  ;;  %v4116_v28 = vld [vmem:[#allocation2 + $0x424] sm:$0xf]  ;;  %v3500_v29 = vld [vmem:[#allocation2 + $0x448] sm:$0xf0] }
  0xc4   :  { %1614 = vmatpush.bf16.msrb.mxu0 %v3131_v31  ;;  %1642 = vmatpush.bf16.msrb.mxu2 %v3135_v34  ;;  %v3291_v27 = vor.u32 %v4070_v26, %v3290_v25  ;;  %v3498_v26 = vld [vmem:[#allocation2 + $0x420] sm:$0xf] }
  0xc7   :  { %1627 = vmatpush.bf16.msrb.mxu1 %v3491_v38  ;;  %1655 = vmatpush.bf16.msrb.mxu3 %v3495_v40  ;;  %v346_v40 = vperm.slane %v2831_v32, 1  ;;  %v3098_v32 = vld [vmem:[#allocation2 + $0x100] sm:$0xf] }
  0xc8   :  { %1615 = vmatpush.bf16.msrb.mxu0 %v3091_v43  ;;  %1643 = vmatpush.bf16.msrb.mxu2 %v3095_v46  ;;  %v3258_v43 = vld [vmem:[#allocation2 + $0x240] sm:$0xf]  ;;  %v4056_v46 = vld [vmem:[#allocation2 + $0x244] sm:$0xf] }
  0xc9   :  { %v3263_v53 = vor.u32 %v4056_v46, %v3260_v47  ;;  %v4006_v46 = vld [vmem:[#allocation2 + $0xb4] sm:$0xf]  ;;  %v3060_v47 = vld [vmem:[#allocation2 + $0xd8] sm:$0xf0] }
  0xcb   :  { %1628 = vmatpush.bf16.msrb.mxu1 %v3451_v50  ;;  %1656 = vmatpush.bf16.msrb.mxu3 %v3455_v52  ;;  %v3259_v52 = vor.u32 %v4061_v45, %v3258_v43  ;;  %v4011_v45 = vld [vmem:[#allocation2 + $0xd4] sm:$0xf0] }
  0xcc   :  { %1616 = vmatpush.bf16.msrb.mxu0 %v3051_v56  ;;  %1644 = vmatpush.bf16.msrb.mxu2 %v3055_v58  ;;  %v4051_v58 = vld [vmem:[#allocation2 + $0x214] sm:$0xf0] }
  0xcd   :  { %v3219_v3 = vor.u32 %v4051_v58, %v3218_v54  ;;  %v4001_v58 = vld [vmem:[#allocation2 + $0x84] sm:$0xf0] }
  0xcf   :  { %1629 = vmatpush.bf16.msrb.mxu1 %v3411_v62  ;;  %1657 = vmatpush.bf16.msrb.mxu3 %v3415_v0  ;;  %v3578_v62 = vld [vmem:[#allocation2 + $0x4c0] sm:$0xf]  ;;  %v4141_v0 = vld [vmem:[#allocation2 + $0x4e4] sm:$0xf0] }
  0xd0   :  { %1617 = vmatpush.bf16.msrb.mxu0 %v3011_v4  ;;  %1645 = vmatpush.bf16.msrb.mxu2 %v3015_v6  ;;  %v3223_v4 = vor.u32 %v4046_v59, %v3220_v60  ;;  %v4041_v6 = vld [vmem:[#allocation2 + $0x1c4] sm:$0xf0]  ;;  %v3579_v11 = vor.u32 %v4141_v0, %v3578_v62  ;;  %v3996_v59 = vld [vmem:[#allocation2 + $0x64] sm:$0xf]  ;;  %v3020_v60 = vld [vmem:[#allocation2 + $0x88] sm:$0xf0] }
  0xd1   :  { %v4091_v0 = vld [vmem:[#allocation2 + $0x354] sm:$0xf0] }
  0xd3   :  { %1630 = vmatpush.bf16.msrb.mxu1 %v3371_v10  ;;  %1658 = vmatpush.bf16.msrb.mxu3 %v3375_v12  ;;  %v3180_v10 = vld [vmem:[#allocation2 + $0x1c8] sm:$0xf0]  ;;  %v3583_v12 = vor.u32 %v4136_v1, %v3580_v2  ;;  %v4086_v1 = vld [vmem:[#allocation2 + $0x334] sm:$0xf]  ;;  %v3380_v2 = vld [vmem:[#allocation2 + $0x358] sm:$0xf0] }
  0xd4   :  { %1618 = vmatpush.bf16.msrb.mxu0 %v2971_v17  ;;  %1646 = vmatpush.bf16.msrb.mxu2 %v2975_v19  ;;  %v4126_v17 = vld [vmem:[#allocation2 + $0x474] sm:$0xf]  ;;  %v3179_v19 = vor.u32 %v4041_v6, %v3178_v5  ;;  %v3183_v20 = vor.u32 %v4036_v9, %v3180_v10  ;;  %v2978_v5 = vld [vmem:[#allocation2 + $0x10] sm:$0xf]  ;;  %v3991_v6 = vld [vmem:[#allocation2 + $0x34] sm:$0xf0] }
  0xd5   :  { %v3543_v25 = vor.u32 %v4126_v17, %v3540_v18  ;;  %v3266_v9 = vld [vmem:[#allocation2 + $0x248] sm:$0xf]  ;;  %v4062_v10 = vld [vmem:[#allocation2 + $0x26c] sm:$0xf0]  ;;  %v3338_v17 = vld [vmem:[#allocation2 + $0x2e0] sm:$0xf] }
  0xd6   :  { %v4081_v18 = vld [vmem:[#allocation2 + $0x304] sm:$0xf0] }
  0xd7   :  { %1631 = vmatpush.bf16.msrb.mxu1 %v3331_v23  ;;  %1659 = vmatpush.bf16.msrb.mxu3 %v3335_v24  ;;  %v3140_v23 = vld [vmem:[#allocation2 + $0x178] sm:$0xf0]  ;;  %v3539_v24 = vor.u32 %v4131_v16, %v3538_v14  ;;  %v4057_v14 = vld [vmem:[#allocation2 + $0x24c] sm:$0xf]  ;;  %v3268_v16 = vld [vmem:[#allocation2 + $0x270] sm:$0xf0] }
  0xdb   :  { %1632 = vmatpush.bf16.msrb.mxu1 %v3291_v27  ;;  %1660 = vmatpush.bf16.msrb.mxu3 %v3295_v30  ;;  %v4121_v27 = vld [vmem:[#allocation2 + $0x444] sm:$0xf0]  ;;  %v3139_v30 = vor.u32 %v4031_v13, %v3138_v21  ;;  %v2979_v21 = vor.u32 %v3991_v6, %v2978_v5  ;;  %v4017_v5 = vld [vmem:[#allocation2 + $0x10c] sm:$0xf]  ;;  %v3108_v6 = vld [vmem:[#allocation2 + $0x130] sm:$0xf0] }
 0x133   :  { %v518_v31 = vpop.f32.mrf.mxu0 }
 0x134   :  { %v519_v37 = vadd.f32 %v518_v31, %v345_v35  ;;  %v3143_v31 = vor.u32 %v4026_v22, %v3140_v23  ;;  %v3267_v22 = vor.u32 %v4062_v10, %v3266_v9  ;;  %v3271_v23 = vor.u32 %v4057_v14, %v3268_v16  ;;  %v3466_v9 = vld [vmem:[#allocation2 + $0x3d8] sm:$0xf]  ;;  %v4112_v10 = vld [vmem:[#allocation2 + $0x3fc] sm:$0xf0] }
 0x135   :  { %v3111_v16 = vor.u32 %v4017_v5, %v3108_v6  ;;  %v3594_v5 = vld [vmem:[#allocation2 + $0x4d0] sm:$0xf]  ;;  %v4143_v6 = vld [vmem:[#allocation2 + $0x4f4] sm:$0xf0] }
 0x139   :  { %v546_v34 = vpop.f32.mrf.mxu2 }
 0x13a   :  { %v547_v50 = vadd.f32 %v546_v34, %v346_v40  ;;  %v4016_v34 = vld [vmem:[#allocation2 + $0x104] sm:$0xf] }
 0x13b   :  { %v532_v33 = vpop.f32.mrf.mxu1  ;;  %v520_v36 = vpop.f32.mrf.mxu0 }
 0x13c   :  { %v533_v39 = vadd.f32 %v532_v33, %v519_v37  ;;  %v521_v41 = vadd.f32 %v520_v36, %v345_v35  ;;  %v4021_v33 = vld [vmem:[#allocation2 + $0x124] sm:$0xf0]  ;;  %v3100_v35 = vld [vmem:[#allocation2 + $0x128] sm:$0xf0]  ;;  %v3499_v36 = vor.u32 %v4121_v27, %v3498_v26  ;;  %v3503_v37 = vor.u32 %v4116_v28, %v3500_v29  ;;  %v4047_v26 = vld [vmem:[#allocation2 + $0x1fc] sm:$0xf] }
 0x13d   :  { %v3103_v43 = vor.u32 %v4016_v34, %v3100_v35  ;;  %v3339_v27 = vor.u32 %v4081_v18, %v3338_v17  ;;  %v3228_v29 = vld [vmem:[#allocation2 + $0x220] sm:$0xf0]  ;;  %v3586_v34 = vld [vmem:[#allocation2 + $0x4c8] sm:$0xf]  ;;  %v4142_v35 = vld [vmem:[#allocation2 + $0x4ec] sm:$0xf0] }
 0x13e   :  { %v565_v49 = vmax.f32 %v533_v39, 0.0  ;;  %v4111_v39 = vld [vmem:[#allocation2 + $0x3f4] sm:$0xf0]  ;;  %v4012_v18 = vld [vmem:[#allocation2 + $0xdc] sm:$0xf0] }
 0x13f   :  { %v3066_v17 = vld [vmem:[#allocation2 + $0xb8] sm:$0xf] }
 0x141   :  { %v560_v38 = vpop.f32.mrf.mxu3  ;;  %v548_v48 = vpop.f32.mrf.mxu2 }
 0x142   :  { %v561_v55 = vadd.f32 %v560_v38, %v547_v50  ;;  %v549_v57 = vadd.f32 %v548_v48, %v346_v40  ;;  %v3458_v38 = vld [vmem:[#allocation2 + $0x3d0] sm:$0xf]  ;;  %v4106_v40 = vld [vmem:[#allocation2 + $0x3d4] sm:$0xf]  ;;  %v3418_v50 = vld [vmem:[#allocation2 + $0x380] sm:$0xf] }
 0x143   :  { %v534_v42 = vpop.f32.mrf.mxu1  ;;  %v3459_v48 = vor.u32 %v4111_v39, %v3458_v38  ;;  %v3231_v39 = vor.u32 %v4047_v26, %v3228_v29  ;;  %v3067_v26 = vor.u32 %v4012_v18, %v3066_v17  ;;  %v4002_v29 = vld [vmem:[#allocation2 + $0x8c] sm:$0xf0]  ;;  %v3595_v17 = vor.u32 %v4143_v6, %v3594_v5  ;;  %v3394_v5 = vld [vmem:[#allocation2 + $0x340] sm:$0xf]  ;;  %v4093_v6 = vld [vmem:[#allocation2 + $0x364] sm:$0xf0] }
 0x144   :  { %v535_v44 = vadd.f32 %v534_v42, %v521_v41  ;;  %v566_v7 = vmax.f32 %v561_v55, 0.0  ;;  %v3460_v41 = vld [vmem:[#allocation2 + $0x3f8] sm:$0xf0]  ;;  %v3099_v42 = vor.u32 %v4021_v33, %v3098_v32  ;;  %v3063_v55 = vor.u32 %v4006_v46, %v3060_v47  ;;  %v4066_v32 = vld [vmem:[#allocation2 + $0x294] sm:$0xf] }
 0x145   :  { %v3300_v33 = vld [vmem:[#allocation2 + $0x2b8] sm:$0xf0]  ;;  %v3587_v46 = vor.u32 %v4142_v35, %v3586_v34  ;;  %v3386_v34 = vld [vmem:[#allocation2 + $0x338] sm:$0xf]  ;;  %v4092_v35 = vld [vmem:[#allocation2 + $0x35c] sm:$0xf0] }
 0x146   :  { %v567_v51 = vmax.f32 %v535_v44, 0.0  ;;  %v3058_v44 = vld [vmem:[#allocation2 + $0xb0] sm:$0xf] }
 0x147   :  { %v3059_v54 = vor.u32 %v4011_v45, %v3058_v44  ;;  %v4037_v44 = vld [vmem:[#allocation2 + $0x1ac] sm:$0xf]  ;;  %v3188_v45 = vld [vmem:[#allocation2 + $0x1d0] sm:$0xf0] }
 0x148   :  { %v4738_v56 = vpack.c.bf16 %v567_v51, %v565_v49  ;;  %v3463_v49 = vor.u32 %v4106_v40, %v3460_v41  ;;  %v4101_v51 = vld [vmem:[#allocation2 + $0x3a4] sm:$0xf0] }
 0x149   :  { %v562_v61 = vpop.f32.mrf.mxu3  ;;  %v3186_v40 = vld [vmem:[#allocation2 + $0x1a8] sm:$0xf] }
 0x14a   :  { %v563_v63 = vadd.f32 %v562_v61, %v549_v57  ;;  %1563 = vmatmul.bf16.vlgmr.msra.gmra.mxu0 %v4738_v56  ;;  %1591 = vmatmul.bf16.vlgmr.msra.gmra.mxu2 %v4738_v56  ;;  %v3018_v57 = vld [vmem:[#allocation2 + $0x60] sm:$0xf]  ;;  %v3419_v61 = vor.u32 %v4101_v51, %v3418_v50  ;;  %v4127_v50 = vld [vmem:[#allocation2 + $0x47c] sm:$0xf]  ;;  %v3548_v51 = vld [vmem:[#allocation2 + $0x4a0] sm:$0xf0] }
 0x14b   :  { %1667 = vmatpush.bf16.msra.mxu0 %v3259_v52  ;;  %1695 = vmatpush.bf16.msra.mxu2 %v3263_v53  ;;  %v4096_v52 = vld [vmem:[#allocation2 + $0x384] sm:$0xf]  ;;  %v3420_v53 = vld [vmem:[#allocation2 + $0x3a8] sm:$0xf0] }
 0x14c   :  { %v568_v8 = vmax.f32 %v563_v63, 0.0  ;;  %v3423_v62 = vor.u32 %v4096_v52, %v3420_v53  ;;  %v3378_v63 = vld [vmem:[#allocation2 + $0x330] sm:$0xf]  ;;  %v3191_v53 = vor.u32 %v4037_v44, %v3188_v45  ;;  %v4063_v45 = vld [vmem:[#allocation2 + $0x274] sm:$0xf0] }
 0x14d   :  { %v3274_v44 = vld [vmem:[#allocation2 + $0x250] sm:$0xf] }
 0x14e   :  { %v4742_v15 = vpack.c.bf16 %v568_v8, %v566_v7  ;;  %v3986_v7 = vld [vmem:[#allocation2 + $0x14] sm:$0xf]  ;;  %v2980_v8 = vld [vmem:[#allocation2 + $0x38] sm:$0xf0] }
 0x14f   :  { %1668 = vmatpush.bf16.msra.mxu0 %v3219_v3  ;;  %1696 = vmatpush.bf16.msra.mxu2 %v3223_v4  ;;  %v3019_v3 = vor.u32 %v4001_v58, %v3018_v57  ;;  %v3023_v4 = vor.u32 %v3996_v59, %v3020_v60  ;;  %v2983_v13 = vor.u32 %v3986_v7, %v2980_v8  ;;  %v4027_v57 = vld [vmem:[#allocation2 + $0x15c] sm:$0xf]  ;;  %v3148_v58 = vld [vmem:[#allocation2 + $0x180] sm:$0xf0] }
 0x150   :  { %1577 = vmatmul.bf16.vlgmr.msra.gmra.mxu1 %v4742_v15  ;;  %1605 = vmatmul.bf16.vlgmr.msra.gmra.mxu3 %v4742_v15  ;;  %v3551_v60 = vor.u32 %v4127_v50, %v3548_v51  ;;  %v3346_v50 = vld [vmem:[#allocation2 + $0x2e8] sm:$0xf]  ;;  %v4082_v51 = vld [vmem:[#allocation2 + $0x30c] sm:$0xf0] }
 0x151   :  { %1681 = vmatpush.bf16.msra.mxu1 %v3579_v11  ;;  %1709 = vmatpush.bf16.msra.mxu3 %v3583_v12  ;;  %v3379_v11 = vor.u32 %v4091_v0, %v3378_v63  ;;  %v3383_v12 = vor.u32 %v4086_v1, %v3380_v2  ;;  %v4117_v63 = vld [vmem:[#allocation2 + $0x42c] sm:$0xf]  ;;  %v3508_v0 = vld [vmem:[#allocation2 + $0x450] sm:$0xf0]  ;;  %v3151_v2 = vor.u32 %v4027_v57, %v3148_v58 }
 0x152   :  { %v3511_v8 = vor.u32 %v4117_v63, %v3508_v0  ;;  %v3275_v57 = vor.u32 %v4063_v45, %v3274_v44  ;;  %v3236_v0 = vld [vmem:[#allocation2 + $0x228] sm:$0xf0]  ;;  %v3474_v44 = vld [vmem:[#allocation2 + $0x3e0] sm:$0xf]  ;;  %v4113_v45 = vld [vmem:[#allocation2 + $0x404] sm:$0xf0] }
 0x153   :  { %1669 = vmatpush.bf16.msra.mxu0 %v3179_v19  ;;  %1697 = vmatpush.bf16.msra.mxu2 %v3183_v20  ;;  %v4076_v19 = vld [vmem:[#allocation2 + $0x2e4] sm:$0xf]  ;;  %v3340_v20 = vld [vmem:[#allocation2 + $0x308] sm:$0xf0] }
 0x154   :  { %v3343_v28 = vor.u32 %v4076_v19, %v3340_v20  ;;  %v4007_v19 = vld [vmem:[#allocation2 + $0xbc] sm:$0xf]  ;;  %v3068_v20 = vld [vmem:[#allocation2 + $0xe0] sm:$0xf0] }
 0x155   :  { %1682 = vmatpush.bf16.msra.mxu1 %v3539_v24  ;;  %1710 = vmatpush.bf16.msra.mxu3 %v3543_v25  ;;  %v3226_v24 = vld [vmem:[#allocation2 + $0x1f8] sm:$0xf]  ;;  %v4052_v25 = vld [vmem:[#allocation2 + $0x21c] sm:$0xf0] }
 0x156   :  { %v3227_v38 = vor.u32 %v4052_v25, %v3226_v24  ;;  %v4097_v24 = vld [vmem:[#allocation2 + $0x38c] sm:$0xf]  ;;  %v3428_v25 = vld [vmem:[#allocation2 + $0x3b0] sm:$0xf0] }
 0x157   :  { %1670 = vmatpush.bf16.msra.mxu0 %v3139_v30  ;;  %1698 = vmatpush.bf16.msra.mxu2 %v3143_v31  ;;  %v3298_v30 = vld [vmem:[#allocation2 + $0x290] sm:$0xf]  ;;  %v4071_v31 = vld [vmem:[#allocation2 + $0x2b4] sm:$0xf0] }
 0x158   :  { %v3299_v41 = vor.u32 %v4071_v31, %v3298_v30  ;;  %v3997_v30 = vld [vmem:[#allocation2 + $0x6c] sm:$0xf]  ;;  %v3028_v31 = vld [vmem:[#allocation2 + $0x90] sm:$0xf0] }
 0x159   :  { %1683 = vmatpush.bf16.msra.mxu1 %v3499_v36  ;;  %1711 = vmatpush.bf16.msra.mxu3 %v3503_v37  ;;  %v4137_v36 = vld [vmem:[#allocation2 + $0x4cc] sm:$0xf]  ;;  %v3588_v37 = vld [vmem:[#allocation2 + $0x4f0] sm:$0xf0] }
 0x15a   :  { %1619 = vmatmul.bf16.vlgmr.msrb.gmra.mxu0 %v4738_v56  ;;  %1647 = vmatmul.bf16.vlgmr.msrb.gmra.mxu2 %v4738_v56  ;;  %v3591_v47 = vor.u32 %v4137_v36, %v3588_v37  ;;  %v4087_v36 = vld [vmem:[#allocation2 + $0x33c] sm:$0xf]  ;;  %v3388_v37 = vld [vmem:[#allocation2 + $0x360] sm:$0xf0] }
 0x15b   :  { %1671 = vmatpush.bf16.msra.mxu0 %v3099_v42  ;;  %1699 = vmatpush.bf16.msra.mxu2 %v3103_v43  ;;  %v3303_v42 = vor.u32 %v4066_v32, %v3300_v33  ;;  %v4042_v43 = vld [vmem:[#allocation2 + $0x1cc] sm:$0xf0]  ;;  %v3431_v33 = vor.u32 %v4097_v24, %v3428_v25 }
 0x15c   :  { %v3187_v52 = vor.u32 %v4042_v43, %v3186_v40  ;;  %v2986_v40 = vld [vmem:[#allocation2 + $0x18] sm:$0xf]  ;;  %v2988_v43 = vld [vmem:[#allocation2 + $0x40] sm:$0xf0] }
 0x15d   :  { %1684 = vmatpush.bf16.msra.mxu1 %v3459_v48  ;;  %1712 = vmatpush.bf16.msra.mxu3 %v3463_v49  ;;  %v3546_v48 = vld [vmem:[#allocation2 + $0x478] sm:$0xf]  ;;  %v4132_v49 = vld [vmem:[#allocation2 + $0x49c] sm:$0xf0] }
 0x15e   :  { %v3547_v59 = vor.u32 %v4132_v49, %v3546_v48  ;;  %v4058_v48 = vld [vmem:[#allocation2 + $0x254] sm:$0xf]  ;;  %v3276_v49 = vld [vmem:[#allocation2 + $0x278] sm:$0xf0] }
 0x15f   :  { %1672 = vmatpush.bf16.msra.mxu0 %v3059_v54  ;;  %1700 = vmatpush.bf16.msra.mxu2 %v3063_v55  ;;  %v3146_v54 = vld [vmem:[#allocation2 + $0x158] sm:$0xf]  ;;  %v4032_v55 = vld [vmem:[#allocation2 + $0x17c] sm:$0xf0]  ;;  %v3279_v58 = vor.u32 %v4058_v48, %v3276_v49 }
 0x160   :  { %1633 = vmatmul.bf16.vlgmr.msrb.gmra.mxu1 %v4742_v15  ;;  %1661 = vmatmul.bf16.vlgmr.msrb.gmra.mxu3 %v4742_v15  ;;  %v3147_v1 = vor.u32 %v4032_v55, %v3146_v54 }
 0x161   :  { %1685 = vmatpush.bf16.msra.mxu1 %v3419_v61  ;;  %1713 = vmatpush.bf16.msra.mxu3 %v3423_v62  ;;  %v3506_v61 = vld [vmem:[#allocation2 + $0x428] sm:$0xf]  ;;  %v4122_v62 = vld [vmem:[#allocation2 + $0x44c] sm:$0xf0] }
 0x162   :  { %v3507_v7 = vor.u32 %v4122_v62, %v3506_v61  ;;  %v4048_v61 = vld [vmem:[#allocation2 + $0x204] sm:$0xf]  ;;  %v3347_v62 = vor.u32 %v4082_v51, %v3346_v50  ;;  %v3074_v50 = vld [vmem:[#allocation2 + $0xc0] sm:$0xf]  ;;  %v4013_v51 = vld [vmem:[#allocation2 + $0xe4] sm:$0xf0] }
 0x163   :  { %1673 = vmatpush.bf16.msra.mxu0 %v3019_v3  ;;  %1701 = vmatpush.bf16.msra.mxu2 %v3023_v4  ;;  %v3106_v3 = vld [vmem:[#allocation2 + $0x108] sm:$0xf]  ;;  %v4022_v4 = vld [vmem:[#allocation2 + $0x12c] sm:$0xf0] }
 0x164   :  { %v3107_v14 = vor.u32 %v4022_v4, %v3106_v3  ;;  %v4067_v3 = vld [vmem:[#allocation2 + $0x29c] sm:$0xf]  ;;  %v3308_v4 = vld [vmem:[#allocation2 + $0x2c0] sm:$0xf0] }
 0x165   :  { %1686 = vmatpush.bf16.msra.mxu1 %v3379_v11  ;;  %1714 = vmatpush.bf16.msra.mxu3 %v3383_v12  ;;  %v4107_v11 = vld [vmem:[#allocation2 + $0x3dc] sm:$0xf]  ;;  %v3468_v12 = vld [vmem:[#allocation2 + $0x400] sm:$0xf0] }
 0x167   :  { %1674 = vmatpush.bf16.msra.mxu0 %v2979_v21  ;;  %1702 = vmatpush.bf16.msra.mxu2 %v2983_v13  ;;  %v3467_v21 = vor.u32 %v4112_v10, %v3466_v9  ;;  %v3471_v13 = vor.u32 %v4107_v11, %v3468_v12  ;;  %v3239_v10 = vor.u32 %v4048_v61, %v3236_v0  ;;  %v4003_v0 = vld [vmem:[#allocation2 + $0x94] sm:$0xf0] }
 0x168   :  { %v3311_v12 = vor.u32 %v4067_v3, %v3308_v4  ;;  %v3075_v61 = vor.u32 %v4013_v51, %v3074_v50  ;;  %v3998_v3 = vld [vmem:[#allocation2 + $0x74] sm:$0xf]  ;;  %v3036_v4 = vld [vmem:[#allocation2 + $0x98] sm:$0xf0]  ;;  %v4144_v50 = vld [vmem:[%s5031_s5] sm:$0xff] }
 0x169   :  { %1687 = vmatpush.bf16.msra.mxu1 %v3339_v27  ;;  %1715 = vmatpush.bf16.msra.mxu3 %v3343_v28  ;;  %v3071_v27 = vor.u32 %v4007_v19, %v3068_v20  ;;  %v3026_v28 = vld [vmem:[#allocation2 + $0x68] sm:$0xf]  ;;  %v4038_v19 = vld [vmem:[#allocation2 + $0x1b4] sm:$0xf]  ;;  %v3196_v20 = vld [vmem:[#allocation2 + $0x1d8] sm:$0xf0] }
 0x16a   :  { %1675 = vmatmul.bf16.vlgmr.msra.gmra.mxu0 %v4738_v56  ;;  %1703 = vmatmul.bf16.vlgmr.msra.gmra.mxu2 %v4738_v56  ;;  %v3199_v25 = vor.u32 %v4038_v19, %v3196_v20  ;;  %v3354_v19 = vld [vmem:[#allocation2 + $0x2f0] sm:$0xf]  ;;  %v4083_v20 = vld [vmem:[#allocation2 + $0x314] sm:$0xf0]  ;;  %v4153_v51 = vld [vmem:[%s5031_s5 + $0x48] sm:$0xff] }
 0x16b   :  { %1723 = vmatpush.bf16.msrb.mxu0 %v3267_v22  ;;  %1751 = vmatpush.bf16.msrb.mxu2 %v3271_v23  ;;  %v3426_v22 = vld [vmem:[#allocation2 + $0x388] sm:$0xf]  ;;  %v4102_v23 = vld [vmem:[#allocation2 + $0x3ac] sm:$0xf0] }
 0x16c   :  { %v3427_v32 = vor.u32 %v4102_v23, %v3426_v22  ;;  %v4128_v22 = vld [vmem:[#allocation2 + $0x484] sm:$0xf]  ;;  %v3556_v23 = vld [vmem:[#allocation2 + $0x4a8] sm:$0xf0] }
 0x16d   :  { %1688 = vmatpush.bf16.msra.mxu1 %v3299_v41  ;;  %1716 = vmatpush.bf16.msra.mxu3 %v3303_v42  ;;  %v3992_v41 = vld [vmem:[#allocation2 + $0x3c] sm:$0xf0]  ;;  %v3987_v42 = vld [vmem:[#allocation2 + $0x1c] sm:$0xf] }
 0x16e   :  { %v2987_v54 = vor.u32 %v3992_v41, %v2986_v40  ;;  %v2991_v55 = vor.u32 %v3987_v42, %v2988_v43  ;;  %v4018_v42 = vld [vmem:[#allocation2 + $0x114] sm:$0xf]  ;;  %v3116_v43 = vld [vmem:[#allocation2 + $0x138] sm:$0xf0] }
 0x16f   :  { %1724 = vmatpush.bf16.msrb.mxu0 %v3227_v38  ;;  %1752 = vmatpush.bf16.msrb.mxu2 %v3231_v39  ;;  %v3027_v38 = vor.u32 %v4002_v29, %v3026_v28  ;;  %v3031_v39 = vor.u32 %v3997_v30, %v3028_v31  ;;  %v3559_v29 = vor.u32 %v4128_v22, %v3556_v23  ;;  %v4028_v30 = vld [vmem:[#allocation2 + $0x164] sm:$0xf]  ;;  %v3156_v31 = vld [vmem:[#allocation2 + $0x188] sm:$0xf0] }
 0x170   :  { %1689 = vmatmul.bf16.vlgmr.msra.gmra.mxu1 %v4742_v15  ;;  %1717 = vmatmul.bf16.vlgmr.msra.gmra.mxu3 %v4742_v15  ;;  %v3119_v49 = vor.u32 %v4018_v42, %v3116_v43  ;;  %v4146_v42 = vld [vmem:[%s5031_s5 + $0x10] sm:$0xff]  ;;  %v4155_v43 = vld [vmem:[%s5031_s5 + $0x58] sm:$0xff] }
 0x171   :  { %1737 = vmatpush.bf16.msrb.mxu1 %v3587_v46  ;;  %1765 = vmatpush.bf16.msrb.mxu3 %v3591_v47  ;;  %v3387_v46 = vor.u32 %v4092_v35, %v3386_v34  ;;  %v3391_v47 = vor.u32 %v4087_v36, %v3388_v37  ;;  %v4118_v34 = vld [vmem:[#allocation2 + $0x434] sm:$0xf]  ;;  %v3516_v35 = vld [vmem:[#allocation2 + $0x458] sm:$0xf0]  ;;  %v3159_v37 = vor.u32 %v4028_v30, %v3156_v31 }
 0x172   :  { %v3519_v41 = vor.u32 %v4118_v34, %v3516_v35  ;;  %v4151_v30 = vld [vmem:[%s5031_s5 + $0x38] sm:$0xff]  ;;  %v4149_v35 = vld [vmem:[%s5031_s5 + $0x28] sm:$0xff] }
 0x173   :  { %1725 = vmatpush.bf16.msrb.mxu0 %v3187_v52  ;;  %1753 = vmatpush.bf16.msrb.mxu2 %v3191_v53  ;;  %v4077_v52 = vld [vmem:[#allocation2 + $0x2ec] sm:$0xf]  ;;  %v3348_v53 = vld [vmem:[#allocation2 + $0x310] sm:$0xf0]  ;;  %v4159_v34 = vld [vmem:[%s5031_s5 + $0x78] sm:$0xff] }
 0x174   :  { %v3351_v63 = vor.u32 %v4077_v52, %v3348_v53  ;;  %v3475_v52 = vor.u32 %v4113_v45, %v3474_v44  ;;  %v4165_v44 = vld [vmem:[%s5031_s5 + $0xa8] sm:$0xff]  ;;  %v4174_v45 = vld [vmem:[%s5031_s5 + $0xf0] sm:$0xff] }
 0x175   :  { %1738 = vmatpush.bf16.msrb.mxu1 %v3547_v59  ;;  %1766 = vmatpush.bf16.msrb.mxu3 %v3551_v60  ;;  %v3234_v59 = vld [vmem:[#allocation2 + $0x200] sm:$0xf]  ;;  %v4053_v60 = vld [vmem:[#allocation2 + $0x224] sm:$0xf0] }
 0x176   :  { %v3235_v9 = vor.u32 %v4053_v60, %v3234_v59  ;;  %v4098_v59 = vld [vmem:[#allocation2 + $0x394] sm:$0xf]  ;;  %v3436_v60 = vld [vmem:[#allocation2 + $0x3b8] sm:$0xf0] }
 0x177   :  { %1726 = vmatpush.bf16.msrb.mxu0 %v3147_v1  ;;  %1754 = vmatpush.bf16.msrb.mxu2 %v3151_v2  ;;  %v3306_v1 = vld [vmem:[#allocation2 + $0x298] sm:$0xf]  ;;  %v4072_v2 = vld [vmem:[#allocation2 + $0x2bc] sm:$0xf0] }
 0x178   :  { %v3307_v11 = vor.u32 %v4072_v2, %v3306_v1  ;;  %v3439_v2 = vor.u32 %v4098_v59, %v3436_v60  ;;  %v4171_v59 = vld [vmem:[%s5031_s5 + $0xd8] sm:$0xff] }
 0x179   :  { %1739 = vmatpush.bf16.msrb.mxu1 %v3507_v7  ;;  %1767 = vmatpush.bf16.msrb.mxu3 %v3511_v8  ;;  %v4138_v7 = vld [vmem:[#allocation2 + $0x4d4] sm:$0xf]  ;;  %v3596_v8 = vld [vmem:[#allocation2 + $0x4f8] sm:$0xf0] }
 0x17a   :  { %v3599_v18 = vor.u32 %v4138_v7, %v3596_v8  ;;  %v4088_v7 = vld [vmem:[#allocation2 + $0x344] sm:$0xf]  ;;  %v3396_v8 = vld [vmem:[#allocation2 + $0x368] sm:$0xf0]  ;;  %v4191_v60 = vld [vmem:[%s5031_s5 + $0x178] sm:$0xff] }
 0x17b   :  { %1727 = vmatpush.bf16.msrb.mxu0 %v3107_v14  ;;  %1755 = vmatpush.bf16.msrb.mxu2 %v3111_v16  ;;  %v3194_v14 = vld [vmem:[#allocation2 + $0x1b0] sm:$0xf]  ;;  %v4043_v16 = vld [vmem:[#allocation2 + $0x1d4] sm:$0xf0] }
 0x17c   :  { %v3195_v24 = vor.u32 %v4043_v16, %v3194_v14  ;;  %v3395_v14 = vor.u32 %v4093_v6, %v3394_v5  ;;  %v3399_v16 = vor.u32 %v4088_v7, %v3396_v8  ;;  %v4169_v5 = vld [vmem:[%s5031_s5 + $0xc8] sm:$0xff] }
 0x17d   :  { %1740 = vmatpush.bf16.msrb.mxu1 %v3467_v21  ;;  %1768 = vmatpush.bf16.msrb.mxu3 %v3471_v13  ;;  %v3554_v21 = vld [vmem:[#allocation2 + $0x480] sm:$0xf]  ;;  %v4133_v13 = vld [vmem:[#allocation2 + $0x4a4] sm:$0xf0] }
 0x17e   :  { %v3555_v28 = vor.u32 %v4133_v13, %v3554_v21  ;;  %v4078_v21 = vld [vmem:[#allocation2 + $0x2f4] sm:$0xf]  ;;  %v3356_v13 = vld [vmem:[#allocation2 + $0x318] sm:$0xf0]  ;;  %v4189_v6 = vld [vmem:[%s5031_s5 + $0x168] sm:$0xff] }
 0x17f   :  { %1728 = vmatpush.bf16.msrb.mxu0 %v3067_v26  ;;  %1756 = vmatpush.bf16.msrb.mxu2 %v3071_v27  ;;  %v3154_v26 = vld [vmem:[#allocation2 + $0x160] sm:$0xf]  ;;  %v4033_v27 = vld [vmem:[#allocation2 + $0x184] sm:$0xf0] }
 0x180   :  { %v3155_v36 = vor.u32 %v4033_v27, %v3154_v26  ;;  %v3314_v26 = vld [vmem:[#allocation2 + $0x2a0] sm:$0xf]  ;;  %v4073_v27 = vld [vmem:[#allocation2 + $0x2c4] sm:$0xf0] }
 0x181   :  { %1741 = vmatpush.bf16.msrb.mxu1 %v3427_v32  ;;  %1769 = vmatpush.bf16.msrb.mxu3 %v3431_v33  ;;  %v3514_v32 = vld [vmem:[#allocation2 + $0x430] sm:$0xf]  ;;  %v4123_v33 = vld [vmem:[#allocation2 + $0x454] sm:$0xf0]  ;;  %v3315_v31 = vor.u32 %v4073_v27, %v3314_v26 }
 0x182   :  { %v3515_v40 = vor.u32 %v4123_v33, %v3514_v32  ;;  %v4150_v33 = vld [vmem:[%s5031_s5 + $0x30] sm:$0xff] }
 0x183   :  { %1729 = vmatpush.bf16.msrb.mxu0 %v3027_v38  ;;  %1757 = vmatpush.bf16.msrb.mxu2 %v3031_v39  ;;  %v3114_v38 = vld [vmem:[#allocation2 + $0x110] sm:$0xf]  ;;  %v4023_v39 = vld [vmem:[#allocation2 + $0x134] sm:$0xf0] }
 0x184   :  { %v3115_v48 = vor.u32 %v4023_v39, %v3114_v38  ;;  %v4167_v38 = vld [vmem:[%s5031_s5 + $0xb8] sm:$0xff]  ;;  %v4156_v39 = vld [vmem:[%s5031_s5 + $0x60] sm:$0xff]  ;;  %v4186_v27 = vld [vmem:[%s5031_s5 + $0x150] sm:$0xff] }
 0x185   :  { %1742 = vmatpush.bf16.msrb.mxu1 %v3387_v46  ;;  %1770 = vmatpush.bf16.msrb.mxu3 %v3391_v47  ;;  %v4108_v46 = vld [vmem:[#allocation2 + $0x3e4] sm:$0xf]  ;;  %v3476_v47 = vld [vmem:[#allocation2 + $0x408] sm:$0xf0] }
 0x186   :  { %v3479_v53 = vor.u32 %v4108_v46, %v3476_v47  ;;  %v4145_v46 = vld [vmem:[%s5031_s5 + $0x8] sm:$0xff]  ;;  %v4154_v47 = vld [vmem:[%s5031_s5 + $0x50] sm:$0xff] }
 0x187   :  { %1730 = vmatpush.bf16.msrb.mxu0 %v2987_v54  ;;  %1758 = vmatpush.bf16.msrb.mxu2 %v2991_v55  ;;  %v4008_v54 = vld [vmem:[#allocation2 + $0xc4] sm:$0xf]  ;;  %v3076_v55 = vld [vmem:[#allocation2 + $0xe8] sm:$0xf0] }
 0x189   :  { %1743 = vmatpush.bf16.msrb.mxu1 %v3347_v62  ;;  %1771 = vmatpush.bf16.msrb.mxu3 %v3351_v63  ;;  %v3079_v62 = vor.u32 %v4008_v54, %v3076_v55  ;;  %v3034_v63 = vld [vmem:[#allocation2 + $0x70] sm:$0xf]  ;;  %v4172_v54 = vld [vmem:[%s5031_s5 + $0xe0] sm:$0xff] }
 0x18a   :  { %1731 = vmatmul.bf16.vlgmr.msrb.gmra.mxu0 %v4738_v56  ;;  %1759 = vmatmul.bf16.vlgmr.msrb.gmra.mxu2 %v4738_v56  ;;  %v4152_v55 = vld [vmem:[%s5031_s5 + $0x40] sm:$0xff] }
 0x18b   :  { %1779 = vmatpush.bf16.msra.mxu0 %v3275_v57  ;;  %1807 = vmatpush.bf16.msra.mxu2 %v3279_v58  ;;  %v3434_v57 = vld [vmem:[#allocation2 + $0x390] sm:$0xf]  ;;  %v4103_v58 = vld [vmem:[#allocation2 + $0x3b4] sm:$0xf0] }
 0x18c   :  { %v3435_v1 = vor.u32 %v4103_v58, %v3434_v57  ;;  %v4162_v57 = vld [vmem:[%s5031_s5 + $0x90] sm:$0xff] }
 0x18d   :  { %1744 = vmatpush.bf16.msrb.mxu1 %v3307_v11  ;;  %1772 = vmatpush.bf16.msrb.mxu3 %v3311_v12  ;;  %v2994_v11 = vld [vmem:[#allocation2 + $0x20] sm:$0xf]  ;;  %v3993_v12 = vld [vmem:[#allocation2 + $0x44] sm:$0xf0]  ;;  %v4182_v58 = vld [vmem:[%s5031_s5 + $0x130] sm:$0xff] }
 0x18e   :  { %v2995_v22 = vor.u32 %v3993_v12, %v2994_v11  ;;  %v4168_v12 = vld [vmem:[%s5031_s5 + $0xc0] sm:$0xff] }
 0x18f   :  { %1780 = vmatpush.bf16.msra.mxu0 %v3235_v9  ;;  %1808 = vmatpush.bf16.msra.mxu2 %v3239_v10  ;;  %v3035_v9 = vor.u32 %v4003_v0, %v3034_v63  ;;  %v3039_v10 = vor.u32 %v3998_v3, %v3036_v4  ;;  %v4170_v0 = vld [vmem:[%s5031_s5 + $0xd0] sm:$0xff]  ;;  %v4180_v3 = vld [vmem:[%s5031_s5 + $0x120] sm:$0xff] }
 0x190   :  { %1745 = vmatmul.bf16.vlgmr.msrb.gmra.mxu1 %v4742_v15  ;;  %1773 = vmatmul.bf16.vlgmr.msrb.gmra.mxu3 %v4742_v15  ;;  %v4873_v4 = vld [vmem:[%s5030_s4] sm:$0xff] }
 0x191   :  { %1793 = vmatpush.bf16.msra.mxu1 %v3595_v17  ;;  %1821 = vmatpush.bf16.msra.mxu3 %v3599_v18  ;;  %v3988_v17 = vld [vmem:[#allocation2 + $0x24] sm:$0xf]  ;;  %v2996_v18 = vld [vmem:[#allocation2 + $0x48] sm:$0xf0] }
 0x192   :  { %v2999_v23 = vor.u32 %v3988_v17, %v2996_v18 }
 0x193   :  { %1781 = vmatpush.bf16.msra.mxu0 %v3195_v24  ;;  %1809 = vmatpush.bf16.msra.mxu2 %v3199_v25  ;;  %v3355_v24 = vor.u32 %v4083_v20, %v3354_v19  ;;  %v3359_v25 = vor.u32 %v4078_v21, %v3356_v13  ;;  %v4187_v19 = vld [vmem:[%s5031_s5 + $0x158] sm:$0xff]  ;;  %v736_v21 = vperm.slane %v4873_v4, 1 }
 0x195   :  { %1794 = vmatpush.bf16.msra.mxu1 %v3555_v28  ;;  %1822 = vmatpush.bf16.msra.mxu3 %v3559_v29  ;;  %v4068_v28 = vld [vmem:[#allocation2 + $0x2a4] sm:$0xf]  ;;  %v3316_v29 = vld [vmem:[#allocation2 + $0x2c8] sm:$0xf0] }
 0x196   :  { %v3319_v32 = vor.u32 %v4068_v28, %v3316_v29 }
 0x197   :  { %1782 = vmatpush.bf16.msra.mxu0 %v3155_v36  ;;  %1810 = vmatpush.bf16.msra.mxu2 %v3159_v37  ;;  %v4158_v36 = vld [vmem:[%s5031_s5 + $0x70] sm:$0xff]  ;;  %v4157_v37 = vld [vmem:[%s5031_s5 + $0x68] sm:$0xff] }
 0x199   :  { %1795 = vmatpush.bf16.msra.mxu1 %v3515_v40  ;;  %1823 = vmatpush.bf16.msra.mxu3 %v3519_v41  ;;  %v4166_v40 = vld [vmem:[%s5031_s5 + $0xb0] sm:$0xff]  ;;  %v4175_v41 = vld [vmem:[%s5031_s5 + $0xf8] sm:$0xff] }
 0x19b   :  { %1783 = vmatpush.bf16.msra.mxu0 %v3115_v48  ;;  %1811 = vmatpush.bf16.msra.mxu2 %v3119_v49  ;;  %v4164_v48 = vld [vmem:[%s5031_s5 + $0xa0] sm:$0xff]  ;;  %v4173_v49 = vld [vmem:[%s5031_s5 + $0xe8] sm:$0xff] }
 0x19d   :  { %1796 = vmatpush.bf16.msra.mxu1 %v3475_v52  ;;  %1824 = vmatpush.bf16.msra.mxu3 %v3479_v53  ;;  %v4163_v52 = vld [vmem:[%s5031_s5 + $0x98] sm:$0xff] }
 0x19e   :  { %v4183_v53 = vld [vmem:[%s5031_s5 + $0x138] sm:$0xff] }
 0x19f   :  { %1784 = vmatpush.bf16.msra.mxu0 %v3075_v61  ;;  %1812 = vmatpush.bf16.msra.mxu2 %v3079_v62  ;;  %v4161_v61 = vld [vmem:[%s5031_s5 + $0x88] sm:$0xff] }
 0x1a0   :  { %v4181_v62 = vld [vmem:[%s5031_s5 + $0x128] sm:$0xff] }
 0x1a1   :  { %1797 = vmatpush.bf16.msra.mxu1 %v3435_v1  ;;  %1825 = vmatpush.bf16.msra.mxu3 %v3439_v2  ;;  %v4190_v1 = vld [vmem:[%s5031_s5 + $0x170] sm:$0xff]  ;;  %v4160_v2 = vld [vmem:[%s5031_s5 + $0x80] sm:$0xff] }
 0x1a3   :  { %1785 = vmatpush.bf16.msra.mxu0 %v3035_v9  ;;  %1813 = vmatpush.bf16.msra.mxu2 %v3039_v10  ;;  %v4179_v9 = vld [vmem:[%s5031_s5 + $0x118] sm:$0xff]  ;;  %v735_v10 = vperm.slane %v4873_v4, 0 }
 0x1a5   :  { %1798 = vmatpush.bf16.msra.mxu1 %v3395_v14  ;;  %1826 = vmatpush.bf16.msra.mxu3 %v3399_v16  ;;  %v4188_v14 = vld [vmem:[%s5031_s5 + $0x160] sm:$0xff]  ;;  %v4178_v16 = vld [vmem:[%s5031_s5 + $0x110] sm:$0xff] }
 0x1a7   :  { %1786 = vmatpush.bf16.msra.mxu0 %v2995_v22  ;;  %1814 = vmatpush.bf16.msra.mxu2 %v2999_v23 }
 0x1a9   :  { %1799 = vmatpush.bf16.msra.mxu1 %v3355_v24  ;;  %1827 = vmatpush.bf16.msra.mxu3 %v3359_v25  ;;  %v4177_v24 = vld [vmem:[%s5031_s5 + $0x108] sm:$0xff] }
 0x1aa   :  { %1787 = vmatmul.bf16.vlgmr.msra.gmra.mxu0 %v4738_v56  ;;  %1815 = vmatmul.bf16.vlgmr.msra.gmra.mxu2 %v4738_v56  ;;  %v4148_v56 = vld [vmem:[%s5031_s5 + $0x20] sm:$0xff] }
 0x1ab   :  { %2509 = vmatpush.bf16.msrb.mxu0 %v4151_v30  ;;  %2537 = vmatpush.bf16.msrb.mxu2 %v4167_v38 }
 0x1ad   :  { %1800 = vmatpush.bf16.msra.mxu1 %v3315_v31  ;;  %1828 = vmatpush.bf16.msra.mxu3 %v3319_v32  ;;  %v4176_v31 = vld [vmem:[%s5031_s5 + $0x100] sm:$0xff]  ;;  %v4199_v32 = vld [vmem:[%s5031_s5 + $0x1b8] sm:$0xff] }
 0x1af   :  { %2510 = vmatpush.bf16.msrb.mxu0 %v4150_v33  ;;  %2538 = vmatpush.bf16.msrb.mxu2 %v4166_v40 }
 0x1b0   :  { %1801 = vmatmul.bf16.vlgmr.msra.gmra.mxu1 %v4742_v15  ;;  %1829 = vmatmul.bf16.vlgmr.msra.gmra.mxu3 %v4742_v15  ;;  %v4147_v15 = vld [vmem:[%s5031_s5 + $0x18] sm:$0xff] }
 0x1b1   :  { %2523 = vmatpush.bf16.msrb.mxu1 %v4159_v34  ;;  %2551 = vmatpush.bf16.msrb.mxu3 %v4175_v41  ;;  %v737_v41 = vperm.slane %v4873_v4, 2 }
 0x1b3   :  { %2511 = vmatpush.bf16.msrb.mxu0 %v4149_v35  ;;  %2539 = vmatpush.bf16.msrb.mxu2 %v4165_v44  ;;  %v4184_v44 = vld [vmem:[%s5031_s5 + $0x140] sm:$0xff] }
 0x1b5   :  { %2524 = vmatpush.bf16.msrb.mxu1 %v4158_v36  ;;  %2552 = vmatpush.bf16.msrb.mxu3 %v4174_v45  ;;  %v4207_v45 = vld [vmem:[%s5031_s5 + $0x1f8] sm:$0xff] }
 0x1b7   :  { %2512 = vmatpush.bf16.msrb.mxu0 %v4148_v56  ;;  %2540 = vmatpush.bf16.msrb.mxu2 %v4164_v48  ;;  %v4185_v56 = vld [vmem:[%s5031_s5 + $0x148] sm:$0xff] }
 0x1b9   :  { %2525 = vmatpush.bf16.msrb.mxu1 %v4157_v37  ;;  %2553 = vmatpush.bf16.msrb.mxu3 %v4173_v49 }
 0x1bb   :  { %2513 = vmatpush.bf16.msrb.mxu0 %v4147_v15  ;;  %2541 = vmatpush.bf16.msrb.mxu2 %v4163_v52  ;;  %v738_v52 = vperm.slane %v4873_v4, 3 }
 0x1bd   :  { %2526 = vmatpush.bf16.msrb.mxu1 %v4156_v39  ;;  %2554 = vmatpush.bf16.msrb.mxu3 %v4172_v54  ;;  %v4198_v39 = vld [vmem:[%s5031_s5 + $0x1b0] sm:$0xff] }
 0x1bf   :  { %2514 = vmatpush.bf16.msrb.mxu0 %v4146_v42  ;;  %2542 = vmatpush.bf16.msrb.mxu2 %v4162_v57  ;;  %v4196_v57 = vld [vmem:[%s5031_s5 + $0x1a0] sm:$0xff] }
 0x1c1   :  { %2527 = vmatpush.bf16.msrb.mxu1 %v4155_v43  ;;  %2555 = vmatpush.bf16.msrb.mxu3 %v4171_v59 }
 0x1c3   :  { %2515 = vmatpush.bf16.msrb.mxu0 %v4145_v46  ;;  %2543 = vmatpush.bf16.msrb.mxu2 %v4161_v61 }
 0x1c5   :  { %2528 = vmatpush.bf16.msrb.mxu1 %v4154_v47  ;;  %2556 = vmatpush.bf16.msrb.mxu3 %v4170_v0  ;;  %v4197_v47 = vld [vmem:[%s5031_s5 + $0x1a8] sm:$0xff]  ;;  %v4195_v0 = vld [vmem:[%s5031_s5 + $0x198] sm:$0xff] }
 0x1c7   :  { %2516 = vmatpush.bf16.msrb.mxu0 %v4144_v50  ;;  %v1564_v63 = vpop.f32.mrf.mxu0  ;;  %2544 = vmatpush.bf16.msrb.mxu2 %v4160_v2  ;;  %v4206_v50 = vld [vmem:[%s5031_s5 + $0x1f0] sm:$0xff] }
 0x1c8   :  { %v1565_v17 = vadd.f32 %v1564_v63, %v735_v10 }
 0x1c9   :  { %2529 = vmatpush.bf16.msrb.mxu1 %v4153_v51  ;;  %2557 = vmatpush.bf16.msrb.mxu3 %v4169_v5 }
 0x1cb   :  { %2565 = vmatpush.bf16.msra.mxu0 %v4183_v53  ;;  %2593 = vmatpush.bf16.msra.mxu2 %v4199_v32 }
 0x1cd   :  { %2530 = vmatpush.bf16.msrb.mxu1 %v4152_v55  ;;  %v1578_v7 = vpop.f32.mrf.mxu1  ;;  %v1592_v8 = vpop.f32.mrf.mxu2  ;;  %2558 = vmatpush.bf16.msrb.mxu3 %v4168_v12 }
 0x1ce   :  { %v1579_v20 = vadd.f32 %v1578_v7, %v1565_v17  ;;  %v1593_v29 = vadd.f32 %v1592_v8, %v736_v21  ;;  %v4194_v8 = vld [vmem:[%s5031_s5 + $0x190] sm:$0xff] }
 0x1cf   :  { %2566 = vmatpush.bf16.msra.mxu0 %v4182_v58  ;;  %v1566_v11 = vpop.f32.mrf.mxu0  ;;  %2594 = vmatpush.bf16.msra.mxu2 %v4198_v39  ;;  %v4205_v58 = vld [vmem:[%s5031_s5 + $0x1e8] sm:$0xff] }
 0x1d0   :  { %v1567_v13 = vadd.f32 %v1566_v11, %v735_v10  ;;  %v1835_v28 = vmax.f32 %v1579_v20, 0.0 }
 0x1d1   :  { %2579 = vmatpush.bf16.msra.mxu1 %v4191_v60  ;;  %2607 = vmatpush.bf16.msra.mxu3 %v4207_v45  ;;  %v4212_v45 = vld [vmem:[%s5031_s5 + $0x220] sm:$0xff] }
 0x1d3   :  { %2567 = vmatpush.bf16.msra.mxu0 %v4181_v62  ;;  %v1606_v18 = vpop.f32.mrf.mxu3  ;;  %2595 = vmatpush.bf16.msra.mxu2 %v4197_v47 }
 0x1d4   :  { %v1607_v33 = vadd.f32 %v1606_v18, %v1593_v29  ;;  %v4193_v18 = vld [vmem:[%s5031_s5 + $0x188] sm:$0xff] }
 0x1d5   :  { %2580 = vmatpush.bf16.msra.mxu1 %v4190_v1  ;;  %v1580_v22 = vpop.f32.mrf.mxu1  ;;  %v1594_v23 = vpop.f32.mrf.mxu2  ;;  %2608 = vmatpush.bf16.msra.mxu3 %v4206_v50  ;;  %v4201_v29 = vld [vmem:[%s5031_s5 + $0x1c8] sm:$0xff] }
 0x1d6   :  { %v1581_v25 = vadd.f32 %v1580_v22, %v1567_v13  ;;  %v1595_v35 = vadd.f32 %v1594_v23, %v736_v21  ;;  %v1836_v40 = vmax.f32 %v1607_v33, 0.0  ;;  %v4202_v21 = vld [vmem:[%s5031_s5 + $0x1d0] sm:$0xff]  ;;  %v740_v23 = vperm.slane %v4873_v4, 5 }
 0x1d7   :  { %2568 = vmatpush.bf16.msra.mxu0 %v4180_v3  ;;  %v1620_v26 = vpop.f32.mrf.mxu0  ;;  %2596 = vmatpush.bf16.msra.mxu2 %v4196_v57  ;;  %v4209_v57 = vld [vmem:[%s5031_s5 + $0x208] sm:$0xff] }
 0x1d8   :  { %v1845_v30 = vmax.f32 %v1581_v25, 0.0  ;;  %v1621_v48 = vadd.f32 %v1620_v26, %v737_v41  ;;  %v4192_v25 = vld [vmem:[%s5031_s5 + $0x180] sm:$0xff] }
 0x1d9   :  { %2581 = vmatpush.bf16.msra.mxu1 %v4189_v6  ;;  %2609 = vmatpush.bf16.msra.mxu3 %v4205_v58  ;;  %v4204_v6 = vld [vmem:[%s5031_s5 + $0x1e0] sm:$0xff] }
 0x1da   :  { %v1855_v34 = vpack.c.bf16 %v1845_v30, %v1835_v28 }
 0x1db   :  { %2569 = vmatpush.bf16.msra.mxu0 %v4179_v9  ;;  %v1608_v36 = vpop.f32.mrf.mxu3  ;;  %2597 = vmatpush.bf16.msra.mxu2 %v4195_v0 }
 0x1dc   :  { %v1609_v37 = vadd.f32 %v1608_v36, %v1595_v35  ;;  %2517 = vmatmul.bf16.vlgmr.msrb.gmra.mxu0 %v1855_v34  ;;  %v4214_v34 = vld [vmem:[%s5031_s5 + $0x230] sm:$0xff] }
 0x1dd   :  { %2582 = vmatpush.bf16.msra.mxu1 %v4188_v14  ;;  %v1634_v38 = vpop.f32.mrf.mxu1  ;;  %v1648_v15 = vpop.f32.mrf.mxu2  ;;  %2610 = vmatpush.bf16.msra.mxu3 %v4204_v6  ;;  %v739_v14 = vperm.slane %v4873_v4, 4 }
 0x1de   :  { %v1846_v42 = vmax.f32 %v1609_v37, 0.0  ;;  %v1635_v51 = vadd.f32 %v1634_v38, %v1621_v48  ;;  %v1649_v61 = vadd.f32 %v1648_v15, %v738_v52  ;;  %v4200_v37 = vld [vmem:[%s5031_s5 + $0x1c0] sm:$0xff]  ;;  %v4223_v15 = vld [vmem:[%s5031_s5 + $0x278] sm:$0xff] }
 0x1df   :  { %2570 = vmatpush.bf16.msra.mxu0 %v4178_v16  ;;  %v1622_v43 = vpop.f32.mrf.mxu0  ;;  %2598 = vmatpush.bf16.msra.mxu2 %v4194_v8  ;;  %v4203_v16 = vld [vmem:[%s5031_s5 + $0x1d8] sm:$0xff] }
 0x1e0   :  { %v1856_v46 = vpack.c.bf16 %v1846_v42, %v1836_v40  ;;  %v1623_v53 = vadd.f32 %v1622_v43, %v737_v41  ;;  %v1837_v60 = vmax.f32 %v1635_v51, 0.0  ;;  %v4213_v40 = vld [vmem:[%s5031_s5 + $0x228] sm:$0xff]  ;;  %v4222_v43 = vld [vmem:[%s5031_s5 + $0x270] sm:$0xff]  ;;  %v4211_v48 = vld [vmem:[%s5031_s5 + $0x218] sm:$0xff] }
 0x1e1   :  { %2583 = vmatpush.bf16.msra.mxu1 %v4187_v19  ;;  %2611 = vmatpush.bf16.msra.mxu3 %v4203_v16 }
 0x1e2   :  { %2531 = vmatmul.bf16.vlgmr.msrb.gmra.mxu1 %v1856_v46  ;;  %v4221_v46 = vld [vmem:[%s5031_s5 + $0x268] sm:$0xff] }
 0x1e3   :  { %2571 = vmatpush.bf16.msra.mxu0 %v4177_v24  ;;  %v1662_v49 = vpop.f32.mrf.mxu3  ;;  %2599 = vmatpush.bf16.msra.mxu2 %v4193_v18 }
 0x1e4   :  { %v1663_v1 = vadd.f32 %v1662_v49, %v1649_v61  ;;  %v4220_v49 = vld [vmem:[%s5031_s5 + $0x260] sm:$0xff] }
 0x1e5   :  { %2584 = vmatpush.bf16.msra.mxu1 %v4186_v27  ;;  %v1636_v54 = vpop.f32.mrf.mxu1  ;;  %v1650_v55 = vpop.f32.mrf.mxu2  ;;  %2612 = vmatpush.bf16.msra.mxu3 %v4202_v21  ;;  %v4215_v27 = vld [vmem:[%s5031_s5 + $0x238] sm:$0xff] }
 0x1e6   :  { %v1637_v59 = vadd.f32 %v1636_v54, %v1623_v53  ;;  %v1651_v3 = vadd.f32 %v1650_v55, %v738_v52  ;;  %v1838_v9 = vmax.f32 %v1663_v1, 0.0  ;;  %v4210_v52 = vld [vmem:[%s5031_s5 + $0x210] sm:$0xff]  ;;  %v741_v53 = vperm.slane %v4873_v4, 6  ;;  %v4219_v54 = vld [vmem:[%s5031_s5 + $0x258] sm:$0xff]  ;;  %v4208_v1 = vld [vmem:[%s5031_s5 + $0x200] sm:$0xff] }
 0x1e7   :  { %2572 = vmatpush.bf16.msra.mxu0 %v4176_v31  ;;  %v1676_v63 = vpop.f32.mrf.mxu0  ;;  %2600 = vmatpush.bf16.msra.mxu2 %v4192_v25 }
 0x1e8   :  { %v1847_v62 = vmax.f32 %v1637_v59, 0.0  ;;  %v1677_v20 = vadd.f32 %v1676_v63, %v739_v14 }
 0x1e9   :  { %2585 = vmatpush.bf16.msra.mxu1 %v4185_v56  ;;  %2613 = vmatpush.bf16.msra.mxu3 %v4201_v29 }
 0x1ea   :  { %v1857_v2 = vpack.c.bf16 %v1847_v62, %v1837_v60  ;;  %v4218_v60 = vld [vmem:[%s5031_s5 + $0x250] sm:$0xff]  ;;  %v742_v62 = vperm.slane %v4873_v4, 7 }
 0x1eb   :  { %v1664_v5 = vpop.f32.mrf.mxu3  ;;  %2621 = vmatpush.bf16.msrb.mxu0 %v4215_v27 }
 0x1ec   :  { %v1665_v7 = vadd.f32 %v1664_v5, %v1651_v3  ;;  %2545 = vmatmul.bf16.vlgmr.msrb.gmra.mxu2 %v1857_v2  ;;  %v4217_v5 = vld [vmem:[%s5031_s5 + $0x248] sm:$0xff] }
 0x1ed   :  { %2586 = vmatpush.bf16.msra.mxu1 %v4184_v44  ;;  %v1690_v11 = vpop.f32.mrf.mxu1  ;;  %v1704_v12 = vpop.f32.mrf.mxu2  ;;  %2614 = vmatpush.bf16.msra.mxu3 %v4200_v37 }
 0x1ee   :  { %v1848_v10 = vmax.f32 %v1665_v7, 0.0  ;;  %v1691_v22 = vadd.f32 %v1690_v11, %v1677_v20  ;;  %v1705_v32 = vadd.f32 %v1704_v12, %v740_v23  ;;  %v4216_v12 = vld [vmem:[%s5031_s5 + $0x240] sm:$0xff]  ;;  %v732_v20 = vld [vmem:[%s5030_s4 + $0x8] sm:$0x3] }
 0x1ef   :  { %v1678_v19 = vpop.f32.mrf.mxu0  ;;  %2622 = vmatpush.bf16.msrb.mxu0 %v4214_v34  ;;  %v744_v27 = vperm.slane %v732_v20, 1 }
 0x1f0   :  { %v1858_v17 = vpack.c.bf16 %v1848_v10, %v1838_v9  ;;  %v1679_v24 = vadd.f32 %v1678_v19, %v739_v14  ;;  %v1839_v31 = vmax.f32 %v1691_v22, 0.0 }
 0x1f1   :  { %2635 = vmatpush.bf16.msrb.mxu1 %v4223_v15 }
 0x1f2   :  { %2559 = vmatmul.bf16.vlgmr.msrb.gmra.mxu3 %v1858_v17 }
 0x1f3   :  { %v1718_v13 = vpop.f32.mrf.mxu3  ;;  %2623 = vmatpush.bf16.msrb.mxu0 %v4213_v40 }
 0x1f4   :  { %v1719_v35 = vadd.f32 %v1718_v13, %v1705_v32  ;;  %v743_v13 = vperm.slane %v732_v20, 0 }
 0x1f5   :  { %v1692_v26 = vpop.f32.mrf.mxu1  ;;  %v1706_v30 = vpop.f32.mrf.mxu2  ;;  %2636 = vmatpush.bf16.msrb.mxu1 %v4222_v43 }
 0x1f6   :  { %v1693_v28 = vadd.f32 %v1692_v26, %v1679_v24  ;;  %v1707_v56 = vadd.f32 %v1706_v30, %v740_v23  ;;  %v1840_v41 = vmax.f32 %v1719_v35, 0.0 }
 0x1f7   :  { %2624 = vmatpush.bf16.msrb.mxu0 %v4212_v45 }
 0x1f8   :  { %v1849_v33 = vmax.f32 %v1693_v28, 0.0 }
 0x1f9   :  { %2637 = vmatpush.bf16.msrb.mxu1 %v4221_v46 }
 0x1fa   :  { %v1859_v36 = vpack.c.bf16 %v1849_v33, %v1839_v31 }
 0x1fb   :  { %v1720_v38 = vpop.f32.mrf.mxu3  ;;  %2625 = vmatpush.bf16.msrb.mxu0 %v4211_v48  ;;  %v4230_v48 = vld [vmem:[%s5032_s6] ss:$0 sm:$0xff]  ;;  %s4286_s6 = smov [#allocation5]  }
 0x1fc   :  { %v1721_v39 = vadd.f32 %v1720_v38, %v1707_v56  ;;  %2573 = vmatmul.bf16.vlgmr.msra.gmra.mxu0 %v1859_v36  ;;  %s2656_s30 = sshll.u32 %s4286_s6, 4  ;;  %s2657_s30 = int_to_ptr.vmem [resolvable:$true] %s2656_s30 }
 0x1fd   :  { %2638 = vmatpush.bf16.msrb.mxu1 %v4220_v49 }
 0x1fe   :  { %v1850_v42 = vmax.f32 %v1721_v39, 0.0 }
 0x1ff   :  { %2626 = vmatpush.bf16.msrb.mxu0 %v4210_v52 }
 0x200   :  { %v1860_v44 = vpack.c.bf16 %v1850_v42, %v1840_v41 }
 0x201   :  { %2639 = vmatpush.bf16.msrb.mxu1 %v4219_v54 }
 0x202   :  { %2587 = vmatmul.bf16.vlgmr.msra.gmra.mxu1 %v1860_v44 }
 0x203   :  { %2627 = vmatpush.bf16.msrb.mxu0 %v4209_v57 }
 0x205   :  { %2640 = vmatpush.bf16.msrb.mxu1 %v4218_v60 }
 0x207   :  { %v1732_v47 = vpop.f32.mrf.mxu0  ;;  %2628 = vmatpush.bf16.msrb.mxu0 %v4208_v1 }
 0x208   :  { %v1733_v58 = vadd.f32 %v1732_v47, %v741_v53 }
 0x209   :  { %2641 = vmatpush.bf16.msrb.mxu1 %v4217_v5 }
 0x20d   :  { %v1746_v50 = vpop.f32.mrf.mxu1  ;;  %v1760_v51 = vpop.f32.mrf.mxu2  ;;  %2642 = vmatpush.bf16.msrb.mxu1 %v4216_v12 }
 0x20e   :  { %v1747_v61 = vadd.f32 %v1746_v50, %v1733_v58  ;;  %v1761_v7 = vadd.f32 %v1760_v51, %v742_v62 }
 0x20f   :  { %v1734_v55 = vpop.f32.mrf.mxu0 }
 0x210   :  { %v1735_v63 = vadd.f32 %v1734_v55, %v741_v53  ;;  %v1841_v6 = vmax.f32 %v1747_v61, 0.0 }
 0x213   :  { %v1774_v59 = vpop.f32.mrf.mxu3 }
 0x214   :  { %v1775_v9 = vadd.f32 %v1774_v59, %v1761_v7 }
 0x215   :  { %v1748_v0 = vpop.f32.mrf.mxu1  ;;  %v1762_v3 = vpop.f32.mrf.mxu2 }
 0x216   :  { %v1749_v2 = vadd.f32 %v1748_v0, %v1735_v63  ;;  %v1763_v10 = vadd.f32 %v1762_v3, %v742_v62  ;;  %v1842_v16 = vmax.f32 %v1775_v9, 0.0 }
 0x218   :  { %v1851_v8 = vmax.f32 %v1749_v2, 0.0 }
 0x21a   :  { %v1861_v4 = vpack.c.bf16 %v1851_v8, %v1841_v6 }
 0x21b   :  { %v1776_v11 = vpop.f32.mrf.mxu3 }
 0x21c   :  { %v1777_v14 = vadd.f32 %v1776_v11, %v1763_v10  ;;  %2601 = vmatmul.bf16.vlgmr.msra.gmra.mxu2 %v1861_v4 }
 0x21e   :  { %v1852_v17 = vmax.f32 %v1777_v14, 0.0 }
 0x220   :  { %v1862_v18 = vpack.c.bf16 %v1852_v17, %v1842_v16 }
 0x222   :  { %2615 = vmatmul.bf16.vlgmr.msra.gmra.mxu3 %v1862_v18 }
 0x227   :  { %v1788_v19 = vpop.f32.mrf.mxu0 }
 0x228   :  { %v1789_v24 = vadd.f32 %v1788_v19, %v743_v13 }
 0x22d   :  { %v1802_v21 = vpop.f32.mrf.mxu1  ;;  %v1816_v22 = vpop.f32.mrf.mxu2 }
 0x22e   :  { %v1803_v26 = vadd.f32 %v1802_v21, %v1789_v24  ;;  %v1817_v33 = vadd.f32 %v1816_v22, %v744_v27 }
 0x22f   :  { %v1790_v23 = vpop.f32.mrf.mxu0 }
 0x230   :  { %v1791_v28 = vadd.f32 %v1790_v23, %v743_v13  ;;  %v1843_v32 = vmax.f32 %v1803_v26, 0.0 }
 0x233   :  { %v1830_v25 = vpop.f32.mrf.mxu3 }
 0x234   :  { %v1831_v35 = vadd.f32 %v1830_v25, %v1817_v33 }
 0x235   :  { %v1804_v29 = vpop.f32.mrf.mxu1  ;;  %v1818_v31 = vpop.f32.mrf.mxu2 }
 0x236   :  { %v1805_v30 = vadd.f32 %v1804_v29, %v1791_v28  ;;  %v1819_v56 = vadd.f32 %v1818_v31, %v744_v27  ;;  %v1844_v15 = vmax.f32 %v1831_v35, 0.0 }
 0x238   :  { %v1853_v34 = vmax.f32 %v1805_v30, 0.0 }
 0x23a   :  { %v1863_v36 = vpack.c.bf16 %v1853_v34, %v1843_v32 }
 0x23b   :  { %v1832_v37 = vpop.f32.mrf.mxu3 }
 0x23c   :  { %v1833_v38 = vadd.f32 %v1832_v37, %v1819_v56  ;;  %2629 = vmatmul.bf16.vlgmr.msrb.gmra.mxu0 %v1863_v36 }
 0x23e   :  { %v1854_v39 = vmax.f32 %v1833_v38, 0.0 }
 0x240   :  { %v1864_v40 = vpack.c.bf16 %v1854_v39, %v1844_v15 }
 0x242   :  { %2643 = vmatmul.bf16.vlgmr.msrb.gmra.mxu1 %v1864_v40 }
 0x259   :  { %v2518_v41 = vpop.f32.mrf.mxu0 }
 0x25a   :  { %v2519_v51 = vadd.f32 %v4230_v48, %v2518_v41 }
 0x25f   :  { %v2532_v42 = vpop.f32.mrf.mxu1 }
 0x260   :  { %v2533_v53 = vadd.f32 %v2532_v42, %v2519_v51 }
 0x261   :  { %v2520_v43 = vpop.f32.mrf.mxu0 }
 0x262   :  { %v2521_v59 = vadd.f32 %v4230_v48, %v2520_v43 }
 0x267   :  { %v2534_v45 = vpop.f32.mrf.mxu1 }
 0x268   :  { %v2535_v63 = vadd.f32 %v2534_v45, %v2521_v59 }
 0x26f   :  { %v2546_v44 = vpop.f32.mrf.mxu2 }
 0x270   :  { %v2547_v55 = vadd.f32 %v2546_v44, %v2533_v53 }
 0x275   :  { %v2560_v46 = vpop.f32.mrf.mxu3 }
 0x276   :  { %v2561_v57 = vadd.f32 %v2560_v46, %v2547_v55 }
 0x277   :  { %v2548_v49 = vpop.f32.mrf.mxu2 }
 0x278   :  { %v2549_v2 = vadd.f32 %v2548_v49, %v2535_v63 }
 0x279   :  { %v2574_v47 = vpop.f32.mrf.mxu0 }
 0x27a   :  { %v2575_v60 = vadd.f32 %v2574_v47, %v2561_v57 }
 0x27d   :  { %v2562_v52 = vpop.f32.mrf.mxu3 }
 0x27e   :  { %v2563_v5 = vadd.f32 %v2562_v52, %v2549_v2 }
 0x27f   :  { %v2588_v50 = vpop.f32.mrf.mxu1 }
 0x280   :  { %v2589_v0 = vadd.f32 %v2588_v50, %v2575_v60 }
 0x281   :  { %v2576_v54 = vpop.f32.mrf.mxu0 }
 0x282   :  { %v2577_v7 = vadd.f32 %v2576_v54, %v2563_v5 }
 0x287   :  { %v2590_v61 = vpop.f32.mrf.mxu1 }
 0x288   :  { %v2591_v10 = vadd.f32 %v2590_v61, %v2577_v7 }
 0x29f   :  { %v2602_v58 = vpop.f32.mrf.mxu2 }
 0x2a0   :  { %v2603_v3 = vadd.f32 %v2602_v58, %v2589_v0 }
 0x2a5   :  { %v2616_v62 = vpop.f32.mrf.mxu3 }
 0x2a6   :  { %v2617_v6 = vadd.f32 %v2616_v62, %v2603_v3 }
 0x2a7   :  { %v2604_v9 = vpop.f32.mrf.mxu2 }
 0x2a8   :  { %v2605_v14 = vadd.f32 %v2604_v9, %v2591_v10 }
 0x2ad   :  { %v2618_v12 = vpop.f32.mrf.mxu3 }
 0x2ae   :  { %v2619_v17 = vadd.f32 %v2618_v12, %v2605_v14 }
 0x2b9   :  { %v2630_v1 = vpop.f32.mrf.mxu0 }
 0x2ba   :  { %v2631_v8 = vadd.f32 %v2630_v1, %v2617_v6 }
 0x2bf   :  { %v2644_v4 = vpop.f32.mrf.mxu1 }
 0x2c0   :  { %v2645_v11 = vadd.f32 %v2644_v4, %v2631_v8 }
 0x2c1   :  { %v2632_v16 = vpop.f32.mrf.mxu0 }
 0x2c2   :  { %2650 = vst.msk [vmem:[#allocation5] sm:$0xff] %vm2649_vm0, %v2645_v11  ;;  %v2633_v18 = vadd.f32 %v2632_v16, %v2619_v17 }
 0x2c7   :  { %v2646_v19 = vpop.f32.mrf.mxu1 }
 0x2c8   :  { %v2647_v20 = vadd.f32 %v2646_v19, %v2633_v18 }
 0x2ca   :  { %2651 = vst.msk [vmem:[#allocation5 + $0x8] sm:$0xff] %vm2649_vm0, %v2647_v20 }
 0x2cb   :  { %2664 = dma.vmem_to_hbm [thread:$0]  %s2657_s30, 256, %s2659_s10, [#allocation4], %s4287_s11, %s4287_s11, %s4288_s12  }
 0x2cc   :  { %4281 = dma.done.wait [#allocation4], 256  }
 0x2cd   :  { %4282 = vsyncadd [#allocation4], 4294967040 }
 0x2ce   :  { %2669 = vsyncpa [#allocation3], 1 }
 0x2cf   :  { %2670 = vsyncpa [#allocation4], 1 }

</bundles_post_ra>
